<compile_context>
chip_gen: v7x
topology: tpu7x:2x2x1
jax: 0.10.0
libtpu: 0.0.40
codegen_flags: <defaults>
</compile_context>

<pallas_src>
import functools

import jax
import jax.numpy as jnp
from jax import lax
from jax.experimental import pallas as pl
from jax.experimental.pallas import tpu as pltpu


# ----------------------------------------------------------------------------
# Fused kernel: runs one GNNLayer per grid step, node features resident in VMEM
# ----------------------------------------------------------------------------
def gnn_fused_kernel(src_ref, dst_ref,              # scalar prefetch (SMEM): [E] int32
                     x0_ref, ea_ref,                # [N,Hp] f32, [E,De] f32
                     we1_ref, we2_ref,              # [De,Hp], [Hp,Hp]  (this layer)
                     wn1x_ref, wn1a_ref, wn2_ref,   # [Hp,Hp] each      (this layer)
                     bias_ref,                      # [4,Hp]: be1,be2,bn1,bn2
                     o_ref,                         # [N,Hp]
                     x_vmem, ep_vmem, agg_vmem):    # VMEM scratch
    layer = pl.program_id(0)
    n_edges = ep_vmem.shape[0]

    # Layer 0: load the input node features into the resident VMEM buffer.
    @pl.when(layer == 0)
    def _():
        x_vmem[...] = x0_ref[...]

    # Packed per-layer biases (static slices).
    be1 = bias_ref[pl.ds(0, 1), :]
    be2 = bias_ref[pl.ds(1, 1), :]
    bn1 = bias_ref[pl.ds(2, 1), :]
    bn2 = bias_ref[pl.ds(3, 1), :]

    # ---- edge_proj MLP: Linear -> ReLU -> Linear (per edge) ----
    ea = ea_ref[...]                               # [E, De]
    we1 = we1_ref[...]                             # [De, Hp]
    if ea.shape[1] == 1:
        # K=1 matmul is a rank-1 outer product -> VPU broadcast multiply (no MXU pass)
        h_e = jnp.maximum(ea * we1 + be1, 0.0)
    else:
        h_e = jnp.maximum(
            jnp.dot(ea, we1, preferred_element_type=jnp.float32) + be1, 0.0)
    ep_vmem[...] = (jnp.dot(h_e, we2_ref[...], preferred_element_type=jnp.float32)
                    + be2)                         # [E, Hp]

    # ---- message + aggregate (flow='target_to_source', aggr='add') ----
    # msg_e = edge_proj(edge_attr_e) + x[edge_index[1, e]]
    # agg[n] = sum_{e: edge_index[0, e] == n} msg_e
    agg_vmem[...] = jnp.zeros_like(agg_vmem)

    def edge_body(e, carry):
        i = src_ref[e]                             # aggregation target (edge_index[0])
        j = dst_ref[e]                             # gather source      (edge_index[1])
        msg = ep_vmem[pl.ds(e, 1), :] + x_vmem[pl.ds(j, 1), :]
        agg_vmem[pl.ds(i, 1), :] = agg_vmem[pl.ds(i, 1), :] + msg
        return carry

    lax.fori_loop(0, n_edges, edge_body, 0, unroll=True)

    # ---- update MLP on cat([x, agg], -1): Linear(2H,H) -> ReLU -> Linear(H,H) ----
    # (the 2H weight is pre-split into the x-part and the agg-part)
    x = x_vmem[...]
    agg = agg_vmem[...]
    h_n = jnp.maximum(
        jnp.dot(x, wn1x_ref[...], preferred_element_type=jnp.float32)
        + jnp.dot(agg, wn1a_ref[...], preferred_element_type=jnp.float32)
        + bn1, 0.0)
    upd = jnp.dot(h_n, wn2_ref[...], preferred_element_type=jnp.float32) + bn2

    # GNN.forward residual: out += dropout(layer_out).squeeze(1)
    # (dropout p=0.0 -> identity; squeeze(1) is a no-op since H != 1)
    x_new = x + upd
    x_vmem[...] = x_new

    @pl.when(layer == pl.num_programs(0) - 1)
    def _():
        o_ref[...] = x_new


# ----------------------------------------------------------------------------
# Parameter construction (deterministic, PyTorch-Linear-style uniform init)
# ----------------------------------------------------------------------------
def _linear_params(key, fan_in, fan_out):
    kw, kb = jax.random.split(key)
    bound = 1.0 / jnp.sqrt(float(fan_in))
    w = jax.random.uniform(kw, (fan_in, fan_out), jnp.float32, -bound, bound)
    b = jax.random.uniform(kb, (1, fan_out), jnp.float32, -bound, bound)
    return w, b


def make_gnn_params(key, edge_input_dim, hidden_dim, num_layer):
    layers = []
    for _ in range(num_layer):
        key, k1, k2, k3, k4 = jax.random.split(key, 5)
        we1, be1 = _linear_params(k1, edge_input_dim, hidden_dim)
        we2, be2 = _linear_params(k2, hidden_dim, hidden_dim)
        wn1, bn1 = _linear_params(k3, 2 * hidden_dim, hidden_dim)   # cat([x, agg])
        wn2, bn2 = _linear_params(k4, hidden_dim, hidden_dim)
        layers.append(dict(
            we1=we1, be1=be1, we2=we2, be2=be2,
            wn1x=wn1[:hidden_dim, :],   # multiplies x   (first half of cat)
            wn1a=wn1[hidden_dim:, :],   # multiplies agg (second half of cat)
            bn1=bn1, wn2=wn2, bn2=bn2))
    return layers


def _pad2(w, rows, cols):
    return jnp.pad(w, ((0, rows - w.shape[0]), (0, cols - w.shape[1])))


def pack_gnn_params(layer_params, hp):
    """Stack per-layer weights on a leading layer axis, zero-padded to Hp lanes."""
    de = layer_params[0]["we1"].shape[0]
    we1 = jnp.stack([_pad2(p["we1"], de, hp) for p in layer_params])    # [L, De, Hp]
    we2 = jnp.stack([_pad2(p["we2"], hp, hp) for p in layer_params])    # [L, Hp, Hp]
    wn1x = jnp.stack([_pad2(p["wn1x"], hp, hp) for p in layer_params])
    wn1a = jnp.stack([_pad2(p["wn1a"], hp, hp) for p in layer_params])
    wn2 = jnp.stack([_pad2(p["wn2"], hp, hp) for p in layer_params])
    bias = jnp.stack([jnp.concatenate(
        [_pad2(p["be1"], 1, hp), _pad2(p["be2"], 1, hp),
         _pad2(p["bn1"], 1, hp), _pad2(p["bn2"], 1, hp)], axis=0)
        for p in layer_params])                                         # [L, 4, Hp]
    return we1, we2, wn1x, wn1a, wn2, bias


# ----------------------------------------------------------------------------
# Full GNN forward: one fused pallas_call over all layers
# ----------------------------------------------------------------------------
def gnn_forward_pallas(z, edge_index, edge_attr, layer_params):
    n, h = z.shape
    e, de = edge_attr.shape
    num_layer = len(layer_params)
    hp = max(128, pl.cdiv(h, 128) * 128)            # lane-dense hidden dim

    x0 = jnp.pad(z.astype(jnp.float32), ((0, 0), (0, hp - h)))
    we1, we2, wn1x, wn1a, wn2, bias = pack_gnn_params(layer_params, hp)
    src = edge_index[0].astype(jnp.int32)           # aggregation index (edge_index[0])
    dst = edge_index[1].astype(jnp.int32)           # gather index      (edge_index[1])

    grid_spec = pltpu.PrefetchScalarGridSpec(
        num_scalar_prefetch=2,
        grid=(num_layer,),
        in_specs=[
            pl.BlockSpec((n, hp), lambda l, s, d: (0, 0)),            # x0 (layer 0)
            pl.BlockSpec((e, de), lambda l, s, d: (0, 0)),            # edge_attr
            pl.BlockSpec((None, de, hp), lambda l, s, d: (l, 0, 0)),  # we1
            pl.BlockSpec((None, hp, hp), lambda l, s, d: (l, 0, 0)),  # we2
            pl.BlockSpec((None, hp, hp), lambda l, s, d: (l, 0, 0)),  # wn1x
            pl.BlockSpec((None, hp, hp), lambda l, s, d: (l, 0, 0)),  # wn1a
            pl.BlockSpec((None, hp, hp), lambda l, s, d: (l, 0, 0)),  # wn2
            pl.BlockSpec((None, 4, hp), lambda l, s, d: (l, 0, 0)),   # packed biases
        ],
        out_specs=pl.BlockSpec((n, hp), lambda l, s, d: (0, 0)),
        scratch_shapes=[
            pltpu.VMEM((n, hp), jnp.float32),   # resident node features (across layers)
            pltpu.VMEM((e, hp), jnp.float32),   # per-edge MLP output
            pltpu.VMEM((n, hp), jnp.float32),   # aggregation accumulator
        ],
    )

    out = pl.pallas_call(
        gnn_fused_kernel,
        out_shape=jax.ShapeDtypeStruct((n, hp), jnp.float32),
        grid_spec=grid_spec,
        compiler_params=pltpu.CompilerParams(
            dimension_semantics=("arbitrary",)),    # layer axis carries state
    )(src, dst, x0, edge_attr, we1, we2, wn1x, wn1a, wn2, bias)

    return out[:, :h]


# ----------------------------------------------------------------------------
# Pure-JAX reference for verification
# ----------------------------------------------------------------------------
def gnn_forward_ref(z, edge_index, edge_attr, layer_params):
    out = z
    src, dst = edge_index[0], edge_index[1]
    for p in layer_params:
        ep = jnp.maximum(edge_attr @ p["we1"] + p["be1"], 0.0) @ p["we2"] + p["be2"]
        msg = ep + out[dst]
        agg = jnp.zeros_like(out).at[src].add(msg)
        h = jnp.maximum(out @ p["wn1x"] + agg @ p["wn1a"] + p["bn1"], 0.0)
        upd = h @ p["wn2"] + p["bn2"]
        out = out + upd
    return out


if __name__ == "__main__":
    N, E = 8, 16                 # nodes, edges
    HIDDEN = 32                  # hidden_dim
    EDGE_DIM = 1                 # edge_input_dim (module default)
    NUM_LAYER = 2

    key = jax.random.PRNGKey(0)
    k_z, k_ea, k_src, k_dst, k_par = jax.random.split(key, 5)

    z = jax.random.normal(k_z, (N, HIDDEN), jnp.float32)
    edge_attr = jax.random.normal(k_ea, (E, EDGE_DIM), jnp.float32)
    edge_index = jnp.stack([
        jax.random.randint(k_src, (E,), 0, N),
        jax.random.randint(k_dst, (E,), 0, N),
    ]).astype(jnp.int32)                                   # [2, E]

    params = make_gnn_params(k_par, EDGE_DIM, HIDDEN, NUM_LAYER)

    out = gnn_forward_pallas(z, edge_index, edge_attr, params)
    out = jax.block_until_ready(out)

    ref = gnn_forward_ref(z, edge_index, edge_attr, params)
    assert out.shape == (N, HIDDEN)
    assert jnp.allclose(out, ref, atol=1e-4, rtol=1e-4), "mismatch vs reference"

    print("KERNEL_OK")
</pallas_src>

<mosaic_0001>
module attributes {stable_mosaic.version = 11 : i64} {
  func.func @gnn_fused_kernel(%arg0: i32, %arg1: memref<16xi32, #tpu.memory_space<smem>>, %arg2: memref<16xi32, #tpu.memory_space<smem>>, %arg3: memref<8x128xf32, #tpu.memory_space<vmem>>, %arg4: memref<16x1xf32, #tpu.memory_space<vmem>>, %arg5: memref<1x1x128xf32, #tpu.memory_space<vmem>>, %arg6: memref<1x128x128xf32, #tpu.memory_space<vmem>>, %arg7: memref<1x128x128xf32, #tpu.memory_space<vmem>>, %arg8: memref<1x128x128xf32, #tpu.memory_space<vmem>>, %arg9: memref<1x128x128xf32, #tpu.memory_space<vmem>>, %arg10: memref<1x4x128xf32, #tpu.memory_space<vmem>>, %arg11: memref<8x128xf32, #tpu.memory_space<vmem>>, %arg12: memref<8x128xf32, #tpu.memory_space<vmem>>, %arg13: memref<16x128xf32, #tpu.memory_space<vmem>>, %arg14: memref<8x128xf32, #tpu.memory_space<vmem>>) attributes {dimension_semantics = [#tpu.dimension_semantics<arbitrary>], iteration_bounds = array<i64: 2>, scalar_prefetch = 2 : i64, scratch_operands = 3 : i64, tpu.core_type = #tpu.core_type<tc>, window_params = [{pipeline_mode = #tpu.pipeline_mode<synchronous>, transform_indices = @transform_0, window_bounds = array<i64: 8, 128>}, {pipeline_mode = #tpu.pipeline_mode<synchronous>, transform_indices = @transform_1, window_bounds = array<i64: 16, 1>}, {transform_indices = @transform_2, window_bounds = array<i64: 1, 1, 128>}, {transform_indices = @transform_3, window_bounds = array<i64: 1, 128, 128>}, {transform_indices = @transform_4, window_bounds = array<i64: 1, 128, 128>}, {transform_indices = @transform_5, window_bounds = array<i64: 1, 128, 128>}, {transform_indices = @transform_6, window_bounds = array<i64: 1, 128, 128>}, {transform_indices = @transform_7, window_bounds = array<i64: 1, 4, 128>}, {pipeline_mode = #tpu.pipeline_mode<synchronous>, transform_indices = @transform_8, window_bounds = array<i64: 8, 128>}]} {
    %c0_i32 = arith.constant 0 : i32
    %0 = arith.cmpi eq, %arg0, %c0_i32 : i32
    %1 = arith.extui %0 : i1 to i32
    %c0_i32_0 = arith.constant 0 : i32
    %2 = arith.cmpi ne, %1, %c0_i32_0 : i32
    scf.if %2 {
      %c0_109 = arith.constant 0 : index
      %c0_110 = arith.constant 0 : index
      %276 = vector.load %arg3[%c0_109, %c0_110] : memref<8x128xf32, #tpu.memory_space<vmem>>, vector<8x128xf32>
      %c0_111 = arith.constant 0 : index
      %c0_112 = arith.constant 0 : index
      %277 = vector.load %arg12[%c0_111, %c0_112] : memref<8x128xf32, #tpu.memory_space<vmem>>, vector<8x128xf32>
      tpu.vector_store %arg12[%c0_111, %c0_112], %276 {strides = array<i32>} : memref<8x128xf32, #tpu.memory_space<vmem>>, vector<8x128xf32>,
    } else {
    }
    %c0 = arith.constant 0 : index
    %c0_1 = arith.constant 0 : index
    %c0_2 = arith.constant 0 : index
    %3 = vector.load %arg10[%c0, %c0_1, %c0_2] : memref<1x4x128xf32, #tpu.memory_space<vmem>>, vector<1x1x128xf32>
    %4 = vector.shape_cast %3 : vector<1x1x128xf32> to vector<1x128xf32>
    %c0_3 = arith.constant 0 : index
    %c1 = arith.constant 1 : index
    %c0_4 = arith.constant 0 : index
    %5 = vector.load %arg10[%c0_3, %c1, %c0_4] : memref<1x4x128xf32, #tpu.memory_space<vmem>>, vector<1x1x128xf32>
    %6 = vector.shape_cast %5 : vector<1x1x128xf32> to vector<1x128xf32>
    %c0_5 = arith.constant 0 : index
    %c2 = arith.constant 2 : index
    %c0_6 = arith.constant 0 : index
    %7 = vector.load %arg10[%c0_5, %c2, %c0_6] : memref<1x4x128xf32, #tpu.memory_space<vmem>>, vector<1x1x128xf32>
    %8 = vector.shape_cast %7 : vector<1x1x128xf32> to vector<1x128xf32>
    %c0_7 = arith.constant 0 : index
    %c3 = arith.constant 3 : index
    %c0_8 = arith.constant 0 : index
    %9 = vector.load %arg10[%c0_7, %c3, %c0_8] : memref<1x4x128xf32, #tpu.memory_space<vmem>>, vector<1x1x128xf32>
    %10 = vector.shape_cast %9 : vector<1x1x128xf32> to vector<1x128xf32>
    %c0_9 = arith.constant 0 : index
    %c0_10 = arith.constant 0 : index
    %11 = vector.load %arg4[%c0_9, %c0_10] : memref<16x1xf32, #tpu.memory_space<vmem>>, vector<16x1xf32>
    %c0_11 = arith.constant 0 : index
    %c0_12 = arith.constant 0 : index
    %c0_13 = arith.constant 0 : index
    %12 = vector.load %arg5[%c0_11, %c0_12, %c0_13] : memref<1x1x128xf32, #tpu.memory_space<vmem>>, vector<1x1x128xf32>
    %13 = vector.shape_cast %12 : vector<1x1x128xf32> to vector<1x128xf32>
    %14 = vector.broadcast %11 : vector<16x1xf32> to vector<16x128xf32>
    %15 = vector.broadcast %13 : vector<1x128xf32> to vector<16x128xf32>
    %16 = arith.mulf %14, %15 : vector<16x128xf32>
    %17 = vector.broadcast %4 : vector<1x128xf32> to vector<16x128xf32>
    %18 = arith.addf %16, %17 : vector<16x128xf32>
    %cst = arith.constant 0.000000e+00 : f32
    %19 = vector.broadcast %cst : f32 to vector<16x128xf32>
    %20 = arith.maximumf %18, %19 : vector<16x128xf32>
    %c0_14 = arith.constant 0 : index
    %c0_15 = arith.constant 0 : index
    %c0_16 = arith.constant 0 : index
    %21 = vector.load %arg6[%c0_14, %c0_15, %c0_16] : memref<1x128x128xf32, #tpu.memory_space<vmem>>, vector<1x128x128xf32>
    %22 = vector.shape_cast %21 : vector<1x128x128xf32> to vector<128x128xf32>
    %cst_17 = arith.constant dense<0.000000e+00> : vector<16x128xf32>
    %23 = tpu.matmul %20, %22, %cst_17 {dimension_numbers = #tpu.dot_dimension_numbers<[1], [0], [0], [1], [0, 0, 1, 1], [], []>} : vector<16x128xf32>, vector<128x128xf32>, vector<16x128xf32> -> vector<16x128xf32>
    %24 = vector.broadcast %6 : vector<1x128xf32> to vector<16x128xf32>
    %25 = arith.addf %23, %24 : vector<16x128xf32>
    %c0_18 = arith.constant 0 : index
    %c0_19 = arith.constant 0 : index
    %26 = vector.load %arg13[%c0_18, %c0_19] : memref<16x128xf32, #tpu.memory_space<vmem>>, vector<16x128xf32>
    tpu.vector_store %arg13[%c0_18, %c0_19], %25 {strides = array<i32>} : memref<16x128xf32, #tpu.memory_space<vmem>>, vector<16x128xf32>,
    %cst_20 = arith.constant 0.000000e+00 : f32
    %27 = vector.broadcast %cst_20 : f32 to vector<8x128xf32>
    %c0_21 = arith.constant 0 : index
    %c0_22 = arith.constant 0 : index
    %28 = vector.load %arg14[%c0_21, %c0_22] : memref<8x128xf32, #tpu.memory_space<vmem>>, vector<8x128xf32>
    tpu.vector_store %arg14[%c0_21, %c0_22], %27 {strides = array<i32>} : memref<8x128xf32, #tpu.memory_space<vmem>>, vector<8x128xf32>,
    %c0_i32_23 = arith.constant 0 : i32
    %29 = arith.index_cast %c0_i32_23 : i32 to index
    %30 = memref.load %arg1[%29] : memref<16xi32, #tpu.memory_space<smem>>
    %31 = arith.index_cast %c0_i32_23 : i32 to index
    %32 = memref.load %arg2[%31] : memref<16xi32, #tpu.memory_space<smem>>
    %33 = arith.index_cast %c0_i32_23 : i32 to index
    %c0_24 = arith.constant 0 : index
    %34 = vector.load %arg13[%33, %c0_24] : memref<16x128xf32, #tpu.memory_space<vmem>>, vector<1x128xf32>
    %35 = arith.index_cast %32 : i32 to index
    %c0_25 = arith.constant 0 : index
    %36 = vector.load %arg12[%35, %c0_25] : memref<8x128xf32, #tpu.memory_space<vmem>>, vector<1x128xf32>
    %37 = arith.addf %34, %36 : vector<1x128xf32>
    %38 = arith.index_cast %30 : i32 to index
    %c0_26 = arith.constant 0 : index
    %39 = vector.load %arg14[%38, %c0_26] : memref<8x128xf32, #tpu.memory_space<vmem>>, vector<1x128xf32>
    %40 = arith.addf %39, %37 : vector<1x128xf32>
    %41 = arith.index_cast %30 : i32 to index
    %c0_27 = arith.constant 0 : index
    %42 = vector.load %arg14[%41, %c0_27] : memref<8x128xf32, #tpu.memory_space<vmem>>, vector<1x128xf32>
    tpu.vector_store %arg14[%41, %c0_27], %40 {strides = array<i32>} : memref<8x128xf32, #tpu.memory_space<vmem>>, vector<1x128xf32>,
    %c1_i32 = arith.constant 1 : i32
    %43 = arith.index_cast %c1_i32 : i32 to index
    %44 = memref.load %arg1[%43] : memref<16xi32, #tpu.memory_space<smem>>
    %45 = arith.index_cast %c1_i32 : i32 to index
    %46 = memref.load %arg2[%45] : memref<16xi32, #tpu.memory_space<smem>>
    %47 = arith.index_cast %c1_i32 : i32 to index
    %c0_28 = arith.constant 0 : index
    %48 = vector.load %arg13[%47, %c0_28] : memref<16x128xf32, #tpu.memory_space<vmem>>, vector<1x128xf32>
    %49 = arith.index_cast %46 : i32 to index
    %c0_29 = arith.constant 0 : index
    %50 = vector.load %arg12[%49, %c0_29] : memref<8x128xf32, #tpu.memory_space<vmem>>, vector<1x128xf32>
    %51 = arith.addf %48, %50 : vector<1x128xf32>
    %52 = arith.index_cast %44 : i32 to index
    %c0_30 = arith.constant 0 : index
    %53 = vector.load %arg14[%52, %c0_30] : memref<8x128xf32, #tpu.memory_space<vmem>>, vector<1x128xf32>
    %54 = arith.addf %53, %51 : vector<1x128xf32>
    %55 = arith.index_cast %44 : i32 to index
    %c0_31 = arith.constant 0 : index
    %56 = vector.load %arg14[%55, %c0_31] : memref<8x128xf32, #tpu.memory_space<vmem>>, vector<1x128xf32>
    tpu.vector_store %arg14[%55, %c0_31], %54 {strides = array<i32>} : memref<8x128xf32, #tpu.memory_space<vmem>>, vector<1x128xf32>,
    %c2_i32 = arith.constant 2 : i32
    %57 = arith.index_cast %c2_i32 : i32 to index
    %58 = memref.load %arg1[%57] : memref<16xi32, #tpu.memory_space<smem>>
    %59 = arith.index_cast %c2_i32 : i32 to index
    %60 = memref.load %arg2[%59] : memref<16xi32, #tpu.memory_space<smem>>
    %61 = arith.index_cast %c2_i32 : i32 to index
    %c0_32 = arith.constant 0 : index
    %62 = vector.load %arg13[%61, %c0_32] : memref<16x128xf32, #tpu.memory_space<vmem>>, vector<1x128xf32>
    %63 = arith.index_cast %60 : i32 to index
    %c0_33 = arith.constant 0 : index
    %64 = vector.load %arg12[%63, %c0_33] : memref<8x128xf32, #tpu.memory_space<vmem>>, vector<1x128xf32>
    %65 = arith.addf %62, %64 : vector<1x128xf32>
    %66 = arith.index_cast %58 : i32 to index
    %c0_34 = arith.constant 0 : index
    %67 = vector.load %arg14[%66, %c0_34] : memref<8x128xf32, #tpu.memory_space<vmem>>, vector<1x128xf32>
    %68 = arith.addf %67, %65 : vector<1x128xf32>
    %69 = arith.index_cast %58 : i32 to index
    %c0_35 = arith.constant 0 : index
    %70 = vector.load %arg14[%69, %c0_35] : memref<8x128xf32, #tpu.memory_space<vmem>>, vector<1x128xf32>
    tpu.vector_store %arg14[%69, %c0_35], %68 {strides = array<i32>} : memref<8x128xf32, #tpu.memory_space<vmem>>, vector<1x128xf32>,
    %c3_i32 = arith.constant 3 : i32
    %71 = arith.index_cast %c3_i32 : i32 to index
    %72 = memref.load %arg1[%71] : memref<16xi32, #tpu.memory_space<smem>>
    %73 = arith.index_cast %c3_i32 : i32 to index
    %74 = memref.load %arg2[%73] : memref<16xi32, #tpu.memory_space<smem>>
    %75 = arith.index_cast %c3_i32 : i32 to index
    %c0_36 = arith.constant 0 : index
    %76 = vector.load %arg13[%75, %c0_36] : memref<16x128xf32, #tpu.memory_space<vmem>>, vector<1x128xf32>
    %77 = arith.index_cast %74 : i32 to index
    %c0_37 = arith.constant 0 : index
    %78 = vector.load %arg12[%77, %c0_37] : memref<8x128xf32, #tpu.memory_space<vmem>>, vector<1x128xf32>
    %79 = arith.addf %76, %78 : vector<1x128xf32>
    %80 = arith.index_cast %72 : i32 to index
    %c0_38 = arith.constant 0 : index
    %81 = vector.load %arg14[%80, %c0_38] : memref<8x128xf32, #tpu.memory_space<vmem>>, vector<1x128xf32>
    %82 = arith.addf %81, %79 : vector<1x128xf32>
    %83 = arith.index_cast %72 : i32 to index
    %c0_39 = arith.constant 0 : index
    %84 = vector.load %arg14[%83, %c0_39] : memref<8x128xf32, #tpu.memory_space<vmem>>, vector<1x128xf32>
    tpu.vector_store %arg14[%83, %c0_39], %82 {strides = array<i32>} : memref<8x128xf32, #tpu.memory_space<vmem>>, vector<1x128xf32>,
    %c4_i32 = arith.constant 4 : i32
    %85 = arith.index_cast %c4_i32 : i32 to index
    %86 = memref.load %arg1[%85] : memref<16xi32, #tpu.memory_space<smem>>
    %87 = arith.index_cast %c4_i32 : i32 to index
    %88 = memref.load %arg2[%87] : memref<16xi32, #tpu.memory_space<smem>>
    %89 = arith.index_cast %c4_i32 : i32 to index
    %c0_40 = arith.constant 0 : index
    %90 = vector.load %arg13[%89, %c0_40] : memref<16x128xf32, #tpu.memory_space<vmem>>, vector<1x128xf32>
    %91 = arith.index_cast %88 : i32 to index
    %c0_41 = arith.constant 0 : index
    %92 = vector.load %arg12[%91, %c0_41] : memref<8x128xf32, #tpu.memory_space<vmem>>, vector<1x128xf32>
    %93 = arith.addf %90, %92 : vector<1x128xf32>
    %94 = arith.index_cast %86 : i32 to index
    %c0_42 = arith.constant 0 : index
    %95 = vector.load %arg14[%94, %c0_42] : memref<8x128xf32, #tpu.memory_space<vmem>>, vector<1x128xf32>
    %96 = arith.addf %95, %93 : vector<1x128xf32>
    %97 = arith.index_cast %86 : i32 to index
    %c0_43 = arith.constant 0 : index
    %98 = vector.load %arg14[%97, %c0_43] : memref<8x128xf32, #tpu.memory_space<vmem>>, vector<1x128xf32>
    tpu.vector_store %arg14[%97, %c0_43], %96 {strides = array<i32>} : memref<8x128xf32, #tpu.memory_space<vmem>>, vector<1x128xf32>,
    %c5_i32 = arith.constant 5 : i32
    %99 = arith.index_cast %c5_i32 : i32 to index
    %100 = memref.load %arg1[%99] : memref<16xi32, #tpu.memory_space<smem>>
    %101 = arith.index_cast %c5_i32 : i32 to index
    %102 = memref.load %arg2[%101] : memref<16xi32, #tpu.memory_space<smem>>
    %103 = arith.index_cast %c5_i32 : i32 to index
    %c0_44 = arith.constant 0 : index
    %104 = vector.load %arg13[%103, %c0_44] : memref<16x128xf32, #tpu.memory_space<vmem>>, vector<1x128xf32>
    %105 = arith.index_cast %102 : i32 to index
    %c0_45 = arith.constant 0 : index
    %106 = vector.load %arg12[%105, %c0_45] : memref<8x128xf32, #tpu.memory_space<vmem>>, vector<1x128xf32>
    %107 = arith.addf %104, %106 : vector<1x128xf32>
    %108 = arith.index_cast %100 : i32 to index
    %c0_46 = arith.constant 0 : index
    %109 = vector.load %arg14[%108, %c0_46] : memref<8x128xf32, #tpu.memory_space<vmem>>, vector<1x128xf32>
    %110 = arith.addf %109, %107 : vector<1x128xf32>
    %111 = arith.index_cast %100 : i32 to index
    %c0_47 = arith.constant 0 : index
    %112 = vector.load %arg14[%111, %c0_47] : memref<8x128xf32, #tpu.memory_space<vmem>>, vector<1x128xf32>
    tpu.vector_store %arg14[%111, %c0_47], %110 {strides = array<i32>} : memref<8x128xf32, #tpu.memory_space<vmem>>, vector<1x128xf32>,
    %c6_i32 = arith.constant 6 : i32
    %113 = arith.index_cast %c6_i32 : i32 to index
    %114 = memref.load %arg1[%113] : memref<16xi32, #tpu.memory_space<smem>>
    %115 = arith.index_cast %c6_i32 : i32 to index
    %116 = memref.load %arg2[%115] : memref<16xi32, #tpu.memory_space<smem>>
    %117 = arith.index_cast %c6_i32 : i32 to index
    %c0_48 = arith.constant 0 : index
    %118 = vector.load %arg13[%117, %c0_48] : memref<16x128xf32, #tpu.memory_space<vmem>>, vector<1x128xf32>
    %119 = arith.index_cast %116 : i32 to index
    %c0_49 = arith.constant 0 : index
    %120 = vector.load %arg12[%119, %c0_49] : memref<8x128xf32, #tpu.memory_space<vmem>>, vector<1x128xf32>
    %121 = arith.addf %118, %120 : vector<1x128xf32>
    %122 = arith.index_cast %114 : i32 to index
    %c0_50 = arith.constant 0 : index
    %123 = vector.load %arg14[%122, %c0_50] : memref<8x128xf32, #tpu.memory_space<vmem>>, vector<1x128xf32>
    %124 = arith.addf %123, %121 : vector<1x128xf32>
    %125 = arith.index_cast %114 : i32 to index
    %c0_51 = arith.constant 0 : index
    %126 = vector.load %arg14[%125, %c0_51] : memref<8x128xf32, #tpu.memory_space<vmem>>, vector<1x128xf32>
    tpu.vector_store %arg14[%125, %c0_51], %124 {strides = array<i32>} : memref<8x128xf32, #tpu.memory_space<vmem>>, vector<1x128xf32>,
    %c7_i32 = arith.constant 7 : i32
    %127 = arith.index_cast %c7_i32 : i32 to index
    %128 = memref.load %arg1[%127] : memref<16xi32, #tpu.memory_space<smem>>
    %129 = arith.index_cast %c7_i32 : i32 to index
    %130 = memref.load %arg2[%129] : memref<16xi32, #tpu.memory_space<smem>>
    %131 = arith.index_cast %c7_i32 : i32 to index
    %c0_52 = arith.constant 0 : index
    %132 = vector.load %arg13[%131, %c0_52] : memref<16x128xf32, #tpu.memory_space<vmem>>, vector<1x128xf32>
    %133 = arith.index_cast %130 : i32 to index
    %c0_53 = arith.constant 0 : index
    %134 = vector.load %arg12[%133, %c0_53] : memref<8x128xf32, #tpu.memory_space<vmem>>, vector<1x128xf32>
    %135 = arith.addf %132, %134 : vector<1x128xf32>
    %136 = arith.index_cast %128 : i32 to index
    %c0_54 = arith.constant 0 : index
    %137 = vector.load %arg14[%136, %c0_54] : memref<8x128xf32, #tpu.memory_space<vmem>>, vector<1x128xf32>
    %138 = arith.addf %137, %135 : vector<1x128xf32>
    %139 = arith.index_cast %128 : i32 to index
    %c0_55 = arith.constant 0 : index
    %140 = vector.load %arg14[%139, %c0_55] : memref<8x128xf32, #tpu.memory_space<vmem>>, vector<1x128xf32>
    tpu.vector_store %arg14[%139, %c0_55], %138 {strides = array<i32>} : memref<8x128xf32, #tpu.memory_space<vmem>>, vector<1x128xf32>,
    %c8_i32 = arith.constant 8 : i32
    %141 = arith.index_cast %c8_i32 : i32 to index
    %142 = memref.load %arg1[%141] : memref<16xi32, #tpu.memory_space<smem>>
    %143 = arith.index_cast %c8_i32 : i32 to index
    %144 = memref.load %arg2[%143] : memref<16xi32, #tpu.memory_space<smem>>
    %145 = arith.index_cast %c8_i32 : i32 to index
    %c0_56 = arith.constant 0 : index
    %146 = vector.load %arg13[%145, %c0_56] : memref<16x128xf32, #tpu.memory_space<vmem>>, vector<1x128xf32>
    %147 = arith.index_cast %144 : i32 to index
    %c0_57 = arith.constant 0 : index
    %148 = vector.load %arg12[%147, %c0_57] : memref<8x128xf32, #tpu.memory_space<vmem>>, vector<1x128xf32>
    %149 = arith.addf %146, %148 : vector<1x128xf32>
    %150 = arith.index_cast %142 : i32 to index
    %c0_58 = arith.constant 0 : index
    %151 = vector.load %arg14[%150, %c0_58] : memref<8x128xf32, #tpu.memory_space<vmem>>, vector<1x128xf32>
    %152 = arith.addf %151, %149 : vector<1x128xf32>
    %153 = arith.index_cast %142 : i32 to index
    %c0_59 = arith.constant 0 : index
    %154 = vector.load %arg14[%153, %c0_59] : memref<8x128xf32, #tpu.memory_space<vmem>>, vector<1x128xf32>
    tpu.vector_store %arg14[%153, %c0_59], %152 {strides = array<i32>} : memref<8x128xf32, #tpu.memory_space<vmem>>, vector<1x128xf32>,
    %c9_i32 = arith.constant 9 : i32
    %155 = arith.index_cast %c9_i32 : i32 to index
    %156 = memref.load %arg1[%155] : memref<16xi32, #tpu.memory_space<smem>>
    %157 = arith.index_cast %c9_i32 : i32 to index
    %158 = memref.load %arg2[%157] : memref<16xi32, #tpu.memory_space<smem>>
    %159 = arith.index_cast %c9_i32 : i32 to index
    %c0_60 = arith.constant 0 : index
    %160 = vector.load %arg13[%159, %c0_60] : memref<16x128xf32, #tpu.memory_space<vmem>>, vector<1x128xf32>
    %161 = arith.index_cast %158 : i32 to index
    %c0_61 = arith.constant 0 : index
    %162 = vector.load %arg12[%161, %c0_61] : memref<8x128xf32, #tpu.memory_space<vmem>>, vector<1x128xf32>
    %163 = arith.addf %160, %162 : vector<1x128xf32>
    %164 = arith.index_cast %156 : i32 to index
    %c0_62 = arith.constant 0 : index
    %165 = vector.load %arg14[%164, %c0_62] : memref<8x128xf32, #tpu.memory_space<vmem>>, vector<1x128xf32>
    %166 = arith.addf %165, %163 : vector<1x128xf32>
    %167 = arith.index_cast %156 : i32 to index
    %c0_63 = arith.constant 0 : index
    %168 = vector.load %arg14[%167, %c0_63] : memref<8x128xf32, #tpu.memory_space<vmem>>, vector<1x128xf32>
    tpu.vector_store %arg14[%167, %c0_63], %166 {strides = array<i32>} : memref<8x128xf32, #tpu.memory_space<vmem>>, vector<1x128xf32>,
    %c10_i32 = arith.constant 10 : i32
    %169 = arith.index_cast %c10_i32 : i32 to index
    %170 = memref.load %arg1[%169] : memref<16xi32, #tpu.memory_space<smem>>
    %171 = arith.index_cast %c10_i32 : i32 to index
    %172 = memref.load %arg2[%171] : memref<16xi32, #tpu.memory_space<smem>>
    %173 = arith.index_cast %c10_i32 : i32 to index
    %c0_64 = arith.constant 0 : index
    %174 = vector.load %arg13[%173, %c0_64] : memref<16x128xf32, #tpu.memory_space<vmem>>, vector<1x128xf32>
    %175 = arith.index_cast %172 : i32 to index
    %c0_65 = arith.constant 0 : index
    %176 = vector.load %arg12[%175, %c0_65] : memref<8x128xf32, #tpu.memory_space<vmem>>, vector<1x128xf32>
    %177 = arith.addf %174, %176 : vector<1x128xf32>
    %178 = arith.index_cast %170 : i32 to index
    %c0_66 = arith.constant 0 : index
    %179 = vector.load %arg14[%178, %c0_66] : memref<8x128xf32, #tpu.memory_space<vmem>>, vector<1x128xf32>
    %180 = arith.addf %179, %177 : vector<1x128xf32>
    %181 = arith.index_cast %170 : i32 to index
    %c0_67 = arith.constant 0 : index
    %182 = vector.load %arg14[%181, %c0_67] : memref<8x128xf32, #tpu.memory_space<vmem>>, vector<1x128xf32>
    tpu.vector_store %arg14[%181, %c0_67], %180 {strides = array<i32>} : memref<8x128xf32, #tpu.memory_space<vmem>>, vector<1x128xf32>,
    %c11_i32 = arith.constant 11 : i32
    %183 = arith.index_cast %c11_i32 : i32 to index
    %184 = memref.load %arg1[%183] : memref<16xi32, #tpu.memory_space<smem>>
    %185 = arith.index_cast %c11_i32 : i32 to index
    %186 = memref.load %arg2[%185] : memref<16xi32, #tpu.memory_space<smem>>
    %187 = arith.index_cast %c11_i32 : i32 to index
    %c0_68 = arith.constant 0 : index
    %188 = vector.load %arg13[%187, %c0_68] : memref<16x128xf32, #tpu.memory_space<vmem>>, vector<1x128xf32>
    %189 = arith.index_cast %186 : i32 to index
    %c0_69 = arith.constant 0 : index
    %190 = vector.load %arg12[%189, %c0_69] : memref<8x128xf32, #tpu.memory_space<vmem>>, vector<1x128xf32>
    %191 = arith.addf %188, %190 : vector<1x128xf32>
    %192 = arith.index_cast %184 : i32 to index
    %c0_70 = arith.constant 0 : index
    %193 = vector.load %arg14[%192, %c0_70] : memref<8x128xf32, #tpu.memory_space<vmem>>, vector<1x128xf32>
    %194 = arith.addf %193, %191 : vector<1x128xf32>
    %195 = arith.index_cast %184 : i32 to index
    %c0_71 = arith.constant 0 : index
    %196 = vector.load %arg14[%195, %c0_71] : memref<8x128xf32, #tpu.memory_space<vmem>>, vector<1x128xf32>
    tpu.vector_store %arg14[%195, %c0_71], %194 {strides = array<i32>} : memref<8x128xf32, #tpu.memory_space<vmem>>, vector<1x128xf32>,
    %c12_i32 = arith.constant 12 : i32
    %197 = arith.index_cast %c12_i32 : i32 to index
    %198 = memref.load %arg1[%197] : memref<16xi32, #tpu.memory_space<smem>>
    %199 = arith.index_cast %c12_i32 : i32 to index
    %200 = memref.load %arg2[%199] : memref<16xi32, #tpu.memory_space<smem>>
    %201 = arith.index_cast %c12_i32 : i32 to index
    %c0_72 = arith.constant 0 : index
    %202 = vector.load %arg13[%201, %c0_72] : memref<16x128xf32, #tpu.memory_space<vmem>>, vector<1x128xf32>
    %203 = arith.index_cast %200 : i32 to index
    %c0_73 = arith.constant 0 : index
    %204 = vector.load %arg12[%203, %c0_73] : memref<8x128xf32, #tpu.memory_space<vmem>>, vector<1x128xf32>
    %205 = arith.addf %202, %204 : vector<1x128xf32>
    %206 = arith.index_cast %198 : i32 to index
    %c0_74 = arith.constant 0 : index
    %207 = vector.load %arg14[%206, %c0_74] : memref<8x128xf32, #tpu.memory_space<vmem>>, vector<1x128xf32>
    %208 = arith.addf %207, %205 : vector<1x128xf32>
    %209 = arith.index_cast %198 : i32 to index
    %c0_75 = arith.constant 0 : index
    %210 = vector.load %arg14[%209, %c0_75] : memref<8x128xf32, #tpu.memory_space<vmem>>, vector<1x128xf32>
    tpu.vector_store %arg14[%209, %c0_75], %208 {strides = array<i32>} : memref<8x128xf32, #tpu.memory_space<vmem>>, vector<1x128xf32>,
    %c13_i32 = arith.constant 13 : i32
    %211 = arith.index_cast %c13_i32 : i32 to index
    %212 = memref.load %arg1[%211] : memref<16xi32, #tpu.memory_space<smem>>
    %213 = arith.index_cast %c13_i32 : i32 to index
    %214 = memref.load %arg2[%213] : memref<16xi32, #tpu.memory_space<smem>>
    %215 = arith.index_cast %c13_i32 : i32 to index
    %c0_76 = arith.constant 0 : index
    %216 = vector.load %arg13[%215, %c0_76] : memref<16x128xf32, #tpu.memory_space<vmem>>, vector<1x128xf32>
    %217 = arith.index_cast %214 : i32 to index
    %c0_77 = arith.constant 0 : index
    %218 = vector.load %arg12[%217, %c0_77] : memref<8x128xf32, #tpu.memory_space<vmem>>, vector<1x128xf32>
    %219 = arith.addf %216, %218 : vector<1x128xf32>
    %220 = arith.index_cast %212 : i32 to index
    %c0_78 = arith.constant 0 : index
    %221 = vector.load %arg14[%220, %c0_78] : memref<8x128xf32, #tpu.memory_space<vmem>>, vector<1x128xf32>
    %222 = arith.addf %221, %219 : vector<1x128xf32>
    %223 = arith.index_cast %212 : i32 to index
    %c0_79 = arith.constant 0 : index
    %224 = vector.load %arg14[%223, %c0_79] : memref<8x128xf32, #tpu.memory_space<vmem>>, vector<1x128xf32>
    tpu.vector_store %arg14[%223, %c0_79], %222 {strides = array<i32>} : memref<8x128xf32, #tpu.memory_space<vmem>>, vector<1x128xf32>,
    %c14_i32 = arith.constant 14 : i32
    %225 = arith.index_cast %c14_i32 : i32 to index
    %226 = memref.load %arg1[%225] : memref<16xi32, #tpu.memory_space<smem>>
    %227 = arith.index_cast %c14_i32 : i32 to index
    %228 = memref.load %arg2[%227] : memref<16xi32, #tpu.memory_space<smem>>
    %229 = arith.index_cast %c14_i32 : i32 to index
    %c0_80 = arith.constant 0 : index
    %230 = vector.load %arg13[%229, %c0_80] : memref<16x128xf32, #tpu.memory_space<vmem>>, vector<1x128xf32>
    %231 = arith.index_cast %228 : i32 to index
    %c0_81 = arith.constant 0 : index
    %232 = vector.load %arg12[%231, %c0_81] : memref<8x128xf32, #tpu.memory_space<vmem>>, vector<1x128xf32>
    %233 = arith.addf %230, %232 : vector<1x128xf32>
    %234 = arith.index_cast %226 : i32 to index
    %c0_82 = arith.constant 0 : index
    %235 = vector.load %arg14[%234, %c0_82] : memref<8x128xf32, #tpu.memory_space<vmem>>, vector<1x128xf32>
    %236 = arith.addf %235, %233 : vector<1x128xf32>
    %237 = arith.index_cast %226 : i32 to index
    %c0_83 = arith.constant 0 : index
    %238 = vector.load %arg14[%237, %c0_83] : memref<8x128xf32, #tpu.memory_space<vmem>>, vector<1x128xf32>
    tpu.vector_store %arg14[%237, %c0_83], %236 {strides = array<i32>} : memref<8x128xf32, #tpu.memory_space<vmem>>, vector<1x128xf32>,
    %c15_i32 = arith.constant 15 : i32
    %239 = arith.index_cast %c15_i32 : i32 to index
    %240 = memref.load %arg1[%239] : memref<16xi32, #tpu.memory_space<smem>>
    %241 = arith.index_cast %c15_i32 : i32 to index
    %242 = memref.load %arg2[%241] : memref<16xi32, #tpu.memory_space<smem>>
    %243 = arith.index_cast %c15_i32 : i32 to index
    %c0_84 = arith.constant 0 : index
    %244 = vector.load %arg13[%243, %c0_84] : memref<16x128xf32, #tpu.memory_space<vmem>>, vector<1x128xf32>
    %245 = arith.index_cast %242 : i32 to index
    %c0_85 = arith.constant 0 : index
    %246 = vector.load %arg12[%245, %c0_85] : memref<8x128xf32, #tpu.memory_space<vmem>>, vector<1x128xf32>
    %247 = arith.addf %244, %246 : vector<1x128xf32>
    %248 = arith.index_cast %240 : i32 to index
    %c0_86 = arith.constant 0 : index
    %249 = vector.load %arg14[%248, %c0_86] : memref<8x128xf32, #tpu.memory_space<vmem>>, vector<1x128xf32>
    %250 = arith.addf %249, %247 : vector<1x128xf32>
    %251 = arith.index_cast %240 : i32 to index
    %c0_87 = arith.constant 0 : index
    %252 = vector.load %arg14[%251, %c0_87] : memref<8x128xf32, #tpu.memory_space<vmem>>, vector<1x128xf32>
    tpu.vector_store %arg14[%251, %c0_87], %250 {strides = array<i32>} : memref<8x128xf32, #tpu.memory_space<vmem>>, vector<1x128xf32>,
    %c16_i32 = arith.constant 16 : i32
    %c0_88 = arith.constant 0 : index
    %c0_89 = arith.constant 0 : index
    %253 = vector.load %arg12[%c0_88, %c0_89] : memref<8x128xf32, #tpu.memory_space<vmem>>, vector<8x128xf32>
    %c0_90 = arith.constant 0 : index
    %c0_91 = arith.constant 0 : index
    %254 = vector.load %arg14[%c0_90, %c0_91] : memref<8x128xf32, #tpu.memory_space<vmem>>, vector<8x128xf32>
    %c0_92 = arith.constant 0 : index
    %c0_93 = arith.constant 0 : index
    %c0_94 = arith.constant 0 : index
    %255 = vector.load %arg7[%c0_92, %c0_93, %c0_94] : memref<1x128x128xf32, #tpu.memory_space<vmem>>, vector<1x128x128xf32>
    %256 = vector.shape_cast %255 : vector<1x128x128xf32> to vector<128x128xf32>
    %cst_95 = arith.constant dense<0.000000e+00> : vector<8x128xf32>
    %257 = tpu.matmul %253, %256, %cst_95 {dimension_numbers = #tpu.dot_dimension_numbers<[1], [0], [0], [1], [0, 0, 1, 1], [], []>} : vector<8x128xf32>, vector<128x128xf32>, vector<8x128xf32> -> vector<8x128xf32>
    %c0_96 = arith.constant 0 : index
    %c0_97 = arith.constant 0 : index
    %c0_98 = arith.constant 0 : index
    %258 = vector.load %arg8[%c0_96, %c0_97, %c0_98] : memref<1x128x128xf32, #tpu.memory_space<vmem>>, vector<1x128x128xf32>
    %259 = vector.shape_cast %258 : vector<1x128x128xf32> to vector<128x128xf32>
    %cst_99 = arith.constant dense<0.000000e+00> : vector<8x128xf32>
    %260 = tpu.matmul %254, %259, %cst_99 {dimension_numbers = #tpu.dot_dimension_numbers<[1], [0], [0], [1], [0, 0, 1, 1], [], []>} : vector<8x128xf32>, vector<128x128xf32>, vector<8x128xf32> -> vector<8x128xf32>
    %261 = arith.addf %257, %260 : vector<8x128xf32>
    %262 = vector.broadcast %8 : vector<1x128xf32> to vector<8x128xf32>
    %263 = arith.addf %261, %262 : vector<8x128xf32>
    %cst_100 = arith.constant 0.000000e+00 : f32
    %264 = vector.broadcast %cst_100 : f32 to vector<8x128xf32>
    %265 = arith.maximumf %263, %264 : vector<8x128xf32>
    %c0_101 = arith.constant 0 : index
    %c0_102 = arith.constant 0 : index
    %c0_103 = arith.constant 0 : index
    %266 = vector.load %arg9[%c0_101, %c0_102, %c0_103] : memref<1x128x128xf32, #tpu.memory_space<vmem>>, vector<1x128x128xf32>
    %267 = vector.shape_cast %266 : vector<1x128x128xf32> to vector<128x128xf32>
    %cst_104 = arith.constant dense<0.000000e+00> : vector<8x128xf32>
    %268 = tpu.matmul %265, %267, %cst_104 {dimension_numbers = #tpu.dot_dimension_numbers<[1], [0], [0], [1], [0, 0, 1, 1], [], []>} : vector<8x128xf32>, vector<128x128xf32>, vector<8x128xf32> -> vector<8x128xf32>
    %269 = vector.broadcast %10 : vector<1x128xf32> to vector<8x128xf32>
    %270 = arith.addf %268, %269 : vector<8x128xf32>
    %271 = arith.addf %253, %270 : vector<8x128xf32>
    %c0_105 = arith.constant 0 : index
    %c0_106 = arith.constant 0 : index
    %272 = vector.load %arg12[%c0_105, %c0_106] : memref<8x128xf32, #tpu.memory_space<vmem>>, vector<8x128xf32>
    tpu.vector_store %arg12[%c0_105, %c0_106], %271 {strides = array<i32>} : memref<8x128xf32, #tpu.memory_space<vmem>>, vector<8x128xf32>,
    %c1_i32_107 = arith.constant 1 : i32
    %273 = arith.cmpi eq, %arg0, %c1_i32_107 : i32
    %274 = arith.extui %273 : i1 to i32
    %c0_i32_108 = arith.constant 0 : i32
    %275 = arith.cmpi ne, %274, %c0_i32_108 : i32
    scf.if %275 {
      %c0_109 = arith.constant 0 : index
      %c0_110 = arith.constant 0 : index
      %276 = vector.load %arg11[%c0_109, %c0_110] : memref<8x128xf32, #tpu.memory_space<vmem>>, vector<8x128xf32>
      tpu.vector_store %arg11[%c0_109, %c0_110], %271 {strides = array<i32>} : memref<8x128xf32, #tpu.memory_space<vmem>>, vector<8x128xf32>,
    } else {
    }
    return
  }
  func.func @transform_0(%arg0: i32, %arg1: memref<16xi32, #tpu.memory_space<smem>>, %arg2: memref<16xi32, #tpu.memory_space<smem>>) -> (i32, i32) {
    %c0_i32 = arith.constant 0 : i32
    %c0_i32_0 = arith.constant 0 : i32
    %c0_i32_1 = arith.constant 0 : i32
    return %c0_i32, %c0_i32_0 : i32, i32
  }
  func.func @transform_1(%arg0: i32, %arg1: memref<16xi32, #tpu.memory_space<smem>>, %arg2: memref<16xi32, #tpu.memory_space<smem>>) -> (i32, i32) {
    %c0_i32 = arith.constant 0 : i32
    %c0_i32_0 = arith.constant 0 : i32
    %c0_i32_1 = arith.constant 0 : i32
    return %c0_i32, %c0_i32_0 : i32, i32
  }
  func.func @transform_2(%arg0: i32, %arg1: memref<16xi32, #tpu.memory_space<smem>>, %arg2: memref<16xi32, #tpu.memory_space<smem>>) -> (i32, i32, i32) {
    %c0_i32 = arith.constant 0 : i32
    %c0_i32_0 = arith.constant 0 : i32
    %c0_i32_1 = arith.constant 0 : i32
    return %arg0, %c0_i32, %c0_i32_0 : i32, i32, i32
  }
  func.func @transform_3(%arg0: i32, %arg1: memref<16xi32, #tpu.memory_space<smem>>, %arg2: memref<16xi32, #tpu.memory_space<smem>>) -> (i32, i32, i32) {
    %c0_i32 = arith.constant 0 : i32
    %c0_i32_0 = arith.constant 0 : i32
    %c0_i32_1 = arith.constant 0 : i32
    return %arg0, %c0_i32, %c0_i32_0 : i32, i32, i32
  }
  func.func @transform_4(%arg0: i32, %arg1: memref<16xi32, #tpu.memory_space<smem>>, %arg2: memref<16xi32, #tpu.memory_space<smem>>) -> (i32, i32, i32) {
    %c0_i32 = arith.constant 0 : i32
    %c0_i32_0 = arith.constant 0 : i32
    %c0_i32_1 = arith.constant 0 : i32
    return %arg0, %c0_i32, %c0_i32_0 : i32, i32, i32
  }
  func.func @transform_5(%arg0: i32, %arg1: memref<16xi32, #tpu.memory_space<smem>>, %arg2: memref<16xi32, #tpu.memory_space<smem>>) -> (i32, i32, i32) {
    %c0_i32 = arith.constant 0 : i32
    %c0_i32_0 = arith.constant 0 : i32
    %c0_i32_1 = arith.constant 0 : i32
    return %arg0, %c0_i32, %c0_i32_0 : i32, i32, i32
  }
  func.func @transform_6(%arg0: i32, %arg1: memref<16xi32, #tpu.memory_space<smem>>, %arg2: memref<16xi32, #tpu.memory_space<smem>>) -> (i32, i32, i32) {
    %c0_i32 = arith.constant 0 : i32
    %c0_i32_0 = arith.constant 0 : i32
    %c0_i32_1 = arith.constant 0 : i32
    return %arg0, %c0_i32, %c0_i32_0 : i32, i32, i32
  }
  func.func @transform_7(%arg0: i32, %arg1: memref<16xi32, #tpu.memory_space<smem>>, %arg2: memref<16xi32, #tpu.memory_space<smem>>) -> (i32, i32, i32) {
    %c0_i32 = arith.constant 0 : i32
    %c0_i32_0 = arith.constant 0 : i32
    %c0_i32_1 = arith.constant 0 : i32
    return %arg0, %c0_i32, %c0_i32_0 : i32, i32, i32
  }
  func.func @transform_8(%arg0: i32, %arg1: memref<16xi32, #tpu.memory_space<smem>>, %arg2: memref<16xi32, #tpu.memory_space<smem>>) -> (i32, i32) {
    %c0_i32 = arith.constant 0 : i32
    %c0_i32_0 = arith.constant 0 : i32
    %c0_i32_1 = arith.constant 0 : i32
    return %c0_i32, %c0_i32_0 : i32, i32
  }
}

</mosaic_0001>

<bundles_post_ra>
// kernel: tpu_custom_call.1
= control target key start
LH: loop header
LB: loop body
LE: loop exit
PB: predicated region body
PF: predicated region fallthrough
CT: control target
= control target key end

     0   :  { %s2393_s0 = inlined_call_operand.vmem [shape: s32[16], index: 0, kind: input, shape index: {}]   ;;  %s2394_s2 = inlined_call_operand.vmem [shape: f32[8,128], index: 2, kind: input, shape index: {}]   ;;  %s2395_s3 = inlined_call_operand.vmem [shape: f32[16,1], index: 3, kind: input, shape index: {}]   ;;  %s2396_s4 = inlined_call_operand.vmem [shape: f32[2,1,128], index: 4, kind: input, shape index: {}]   ;;  %s2397_s5 = inlined_call_operand.hbm [shape: f32[2,128,128], index: 5, kind: input, shape index: {}]   ;;  %s2398_s6 = inlined_call_operand.hbm [shape: f32[2,128,128], index: 6, kind: input, shape index: {}]   ;;  %s2399_s7 = inlined_call_operand.hbm [shape: f32[2,128,128], index: 7, kind: input, shape index: {}]   ;;  %s2400_s8 = inlined_call_operand.hbm [shape: f32[2,128,128], index: 8, kind: input, shape index: {}]   ;;  %s2401_s9 = inlined_call_operand.vmem [shape: f32[2,4,128], index: 9, kind: input, shape index: {}]   ;;  %s2402_s10 = inlined_call_operand.hbm [shape: f32[8,128], index: 10, kind: output, shape index: {}]   ;;  %s2403_s1 = inlined_call_operand.hbm [shape: s32[16], index: 1, kind: input, shape index: {}]  }
   0x1   :  { %2412 = sst [smem:[#allocation25_spill]] %s2397_s5  ;;  %s15_s15 = sshll.u32 %s2393_s0, 4  ;;  %s16_s15 = int_to_ptr.vmem [resolvable:$true] %s15_s15 }
   0x2   :  { %2413 = sst [smem:[#allocation26_spill]] %s2398_s6  ;;  %s1669_s16 = scalar_lea.vmem %s16_s15, 16 }
   0x3   :  { %p1670_p0 = scmp.ne.s32.totalorder %s16_s15, %s1669_s16  ;;  %p1674_p1 = scmp.lt.s32.totalorder %s16_s15, %s16_s15 }
   0x4   :  { %p1675_p2 = scmp.lt.s32.totalorder %s1669_s16, %s1669_s16 }
   0x6   :  { %p1676_p3 = por %p1675_p2, %p1674_p1 }
   0x8   :  { %p1677_p4 = pnand %p1676_p3, %p1670_p0 }
   0xa   :  { %1680 = shalt.err (!%p1677_p4)  }
   0xb   :  { %s1887_s17 = smov [#allocation6]   ;;  %s1681_s20 = scalar_lea.hbm %s2403_s1, 16 }
   0xc   :  { %18 = dma.vmem_to_smem %s16_s15, 16, %s1887_s17, [#allocation5] }
   0xd   :  { %p1682_p5 = scmp.ne.s32.totalorder %s2403_s1, %s1681_s20  ;;  %p1685_p6 = scmp.lt.u32.totalorder %s1681_s20, %s2403_s1 }
   0xf   :  { %p1687_p7 = pnand %p1685_p6, %p1682_p5 }
  0x11   :  { %1690 = shalt.err (!%p1687_p7)  }
  0x12   :  { %s1888_s24 = smov [#allocation7]  }
  0x13   :  { %20 = dma.hbm_to_smem %s2403_s1, 16, %s1888_s24, [#allocation5] }
  0x14   :  { %1853 = dma.done.wait [#allocation5], 32 }
  0x15   :  { %1854 = vsyncadd [#allocation5], 4294967264 }
  0x16   :  { %22 = sfence }
  0x17   :  { %23 = vsyncpa [#allocation9], 0 }
  0x18   :  { %25 = vsyncpa [#allocation9 + $0x1], 0 }
  0x19   :  { %26 = vsyncpa [#allocation12], 0 }
  0x1a   :  { %28 = vsyncpa [#allocation12 + $0x1], 0 }
  0x1b   :  { %29 = vsyncpa [#allocation15], 0 }
  0x1c   :  { %31 = vsyncpa [#allocation15 + $0x1], 0 }
  0x1d   :  { %32 = vsyncpa [#allocation10], 0  ;;  %s1970_s27 = smov 0   ;;  %s1972_s28 = smov 0  }
  0x1e   :  { %s1974_s29 = smov 0   ;;  %s1976_s30 = smov 0  }
  0x1f LB: > { %2414 = sst [smem:[#allocation22_spill]] %s1881_s29  ;;  %s1989_s1 = sadd.s32 4294967295, %s1885_s30   ;;  %s1885_s30 = sphi %s1976_s30, %s2429_s30   ;;  %s1881_s29 = sphi %s1974_s29, %s2431_s29   ;;  %s1877_s28 = sphi %s1972_s28, %s2433_s28   ;;  %s1873_s27 = sphi %s1970_s27, %s2432_s27  }
  0x20   : > { %s1992_s11 = sadd.s32 1, %s1885_s30   ;;  %s113_s13 = sadd.s32 1, %s1881_s29 }
  0x21   : > { %2415 = sst [smem:[#allocation23_spill]] %s1992_s11  ;;  %s110_s12 = ssub.s32 %s1885_s30, %s1992_s11 }
  0x22   : > { %p111_p8 = scmp.eq.s32.totalorder %s110_s12, 0  ;;  %p120_p9 = scmp.ne.s32.totalorder %s1881_s29, %s1877_s28 }
  0x23   : > { %p121_p10 = scmp.eq.s32.totalorder %s1885_s30, 0  ;;  %p126_p11 = scmp.ne.s32.totalorder %s1877_s28, %s1873_s27 }
  0x24   : > { %s2002_s14 = scalar_select %p111_p8, %s1881_s29, %s113_s13  }
  0x25   : > { %p122_p12 = por %p121_p10, %p120_p9  ;;  %p127_p13 = scmp.eq.s32.totalorder %s1989_s1, 0 }
  0x26   : > { %2416 = sst [smem:[#allocation24_spill]] %s2002_s14  ;;  %p1624_p0 = scmp.lt.s32.totalorder %s1885_s30, 2 }
  0x27   : > { %p2006_p1 = por %p127_p13, %p126_p11  ;;  %s2011_s16 = sand.u32 1, %s1881_s29  }
  0x28   : > { %s2014_s17 = sshll.u32 %s2011_s16, 7  ;;  %s2017_s18 = sshll.u32 %s1885_s30, 11 }
  0x29   : > { %s2417_s15 = scalar_select %p2006_p1, 1, 0 }
  0x2a   : > { %p2019_p2 = pnand %p1624_p0, %p122_p12  ;;  %s308_s20 = sand.u32 1, %s1885_s30  }
  0x2b   : > { %s2419_s6 = sld [smem:[#allocation26_spill]]  ;;  %s312_s0 = scalar_lea.vmem [#allocation11], %s2014_s17 }
  0x2c   : > { %s319_s24 = sshll.u32 %s312_s0, 4  ;;  %s2035_s25 = scalar_lea.sflag [#allocation12], %s308_s20  ;;  %s2032_s24 = int_to_ptr.vmem [resolvable:$true] %s319_s24 }
  0x2d   : > { %p2041_p6 = pneg %p2019_p2 }
  0x31   : > { %s2028_s23 = scalar_lea.hbm %s2419_s6, %s2017_s18  ;;  %s1696_s21 = scalar_lea.hbm %s2419_s6, 4096 }
  0x32   : > { %s1691_s26 = scalar_lea.hbm %s2028_s23, 2048  ;;  %p1697_p9 = scmp.lt.u32.totalorder %s2028_s23, %s2419_s6 }
  0x33   : > { %p1692_p5 = scmp.ne.s32.totalorder %s2028_s23, %s1691_s26  ;;  %p1698_p10 = scmp.lt.u32.totalorder %s1696_s21, %s1691_s26 }
  0x34   : > { %p1700_p12 = scmp.lt.u32.totalorder %s1691_s26, %s2028_s23 }
  0x35   : > { %p1694_p7 = pnand %p2041_p6, %p1692_p5  ;;  %p1699_p11 = por %p1698_p10, %p1697_p9 }
  0x37   : > { %p1695_p8 = pneg %p1694_p7  ;;  %p1701_p13 = por %p1700_p12, %p1699_p11 }
  0x39   : > { %p1702_p0 = pnand %p1701_p13, %p1695_p8 }
  0x3b   : > { %1705 = shalt.err (!%p1702_p0)
}
  0x3c   : > { %s1706_s20 = scalar_lea.vmem %s2032_s24, 2048  ;;  %s1889_s12 = smov [#allocation11]  }
  0x3d   : > { %p1707_p5 = scmp.ne.s32.totalorder %s2032_s24, %s1706_s20  ;;  %s1711_s13 = sshll.u32 %s1889_s12, 4  ;;  %s1712_s13 = int_to_ptr.vmem [resolvable:$false] %s1711_s13 }
  0x3e   : > { %s1713_s22 = scalar_lea.vmem %s1712_s13, 4096  ;;  %p1714_p4 = scmp.lt.s32.totalorder %s2032_s24, %s1712_s13 }
  0x3f   : > { %p1709_p7 = pnand %p1707_p5, %p2041_p6  ;;  %p1715_p1 = scmp.lt.s32.totalorder %s1713_s22, %s1706_s20 }
  0x41   : > { %p1710_p3 = pneg %p1709_p7  ;;  %p1716_p9 = por %p1715_p1, %p1714_p4 }
  0x43   : > { %p1717_p10 = pnand %p1716_p9, %p1710_p3 }
  0x45   : > { %1720 = shalt.err (!%p1717_p10)
}
  0x46   : > { %s2405_s26 = smov 128   ;;  %s2407_s21 = smov 8  }
  0x47   : > { %1617 = dma.hbm_to_vmem [thread:$0]  (!%p2019_p2), %s2028_s23, 2048, %s2032_s24, %s2035_s25, %s2405_s26, %s2405_s26, %s2407_s21  }
  0x48   : > { %p2421_p1 = scmp.lt.s32.totalorder %s1885_s30, 3  ;;  %p2422_p3 = scmp.ge.s32.totalorder %s1885_s30, 1 }
  0x49   : > { %s2424_s5 = sld [smem:[#allocation25_spill]]  ;;  %s291_s22 = scalar_lea.vmem [#allocation8], %s2014_s17 }
  0x4a   : > { %p2072_p4 = pnand %p2422_p3, %p2421_p1  ;;  %s298_s6 = sshll.u32 %s291_s22, 4  ;;  %s2083_s6 = int_to_ptr.vmem [resolvable:$true] %s298_s6 }
  0x4b   : > { %s2089_s30 = scalar_lea.hbm %s2399_s7, %s2017_s18  ;;  %s288_s26 = scalar_lea.sflag [#allocation9], %s2011_s16 }
  0x4c   : > { %s2423_s0 = scalar_select %p2072_p4, 1, 0 }
  0x4f   : > { %s2080_s13 = scalar_lea.hbm %s2424_s5, %s2017_s18  ;;  %s1726_s14 = scalar_lea.hbm %s2424_s5, 4096 }
  0x50   : > { %s1721_s21 = scalar_lea.hbm %s2080_s13, 2048  ;;  %p1727_p13 = scmp.lt.u32.totalorder %s2080_s13, %s2424_s5 }
  0x51   : > { %p1722_p8 = scmp.ne.s32.totalorder %s2080_s13, %s1721_s21  ;;  %p1728_p0 = scmp.lt.u32.totalorder %s1726_s14, %s1721_s21 }
  0x52   : > { %p1730_p7 = scmp.lt.u32.totalorder %s1721_s21, %s2080_s13 }
  0x53   : > { %p1724_p11 = pnand %p1722_p8, %p2041_p6  ;;  %p1729_p5 = por %p1728_p0, %p1727_p13 }
  0x55   : > { %p1725_p12 = pneg %p1724_p11  ;;  %p1731_p9 = por %p1730_p7, %p1729_p5 }
  0x57   : > { %p1732_p10 = pnand %p1731_p9, %p1725_p12 }
  0x59   : > { %1735 = shalt.err (!%p1732_p10)
}
  0x5a   : > { %s1736_s22 = scalar_lea.vmem %s2083_s6, 2048  ;;  %s1892_s23 = smov [#allocation8]  }
  0x5b   : > { %p1737_p1 = scmp.ne.s32.totalorder %s2083_s6, %s1736_s22  ;;  %s1741_s24 = sshll.u32 %s1892_s23, 4  ;;  %s1742_s24 = int_to_ptr.vmem [resolvable:$false] %s1741_s24 }
  0x5c   : > { %s1743_s29 = scalar_lea.vmem %s1742_s24, 4096  ;;  %p1744_p11 = scmp.lt.s32.totalorder %s2083_s6, %s1742_s24 }
  0x5d   : > { %p1739_p3 = pnand %p1737_p1, %p2041_p6  ;;  %p1745_p4 = scmp.lt.s32.totalorder %s1743_s29, %s1736_s22 }
  0x5f   : > { %p1740_p8 = pneg %p1739_p3  ;;  %p1746_p13 = por %p1745_p4, %p1744_p11 }
  0x61   : > { %p1747_p0 = pnand %p1746_p13, %p1740_p8 }
  0x63   : > { %1750 = shalt.err (!%p1747_p0)
}
  0x64   : > { %s2425_s11 = smov 8   ;;  %s2426_s14 = smov 128  }
  0x65   : > { %1614 = dma.hbm_to_vmem [thread:$0]  (!%p2019_p2), %s2080_s13, 2048, %s2083_s6, %s288_s26, %s2426_s14, %s2426_s14, %s2425_s11  }
  0x66   : > { %s333_s21 = scalar_lea.vmem [#allocation13], %s2014_s17  ;;  %s1751_s12 = scalar_lea.hbm %s2089_s30, 2048 }
  0x67   : > { %s340_s20 = sshll.u32 %s333_s21, 4  ;;  %p1752_p4 = scmp.ne.s32.totalorder %s2089_s30, %s1751_s12  ;;  %s2119_s20 = int_to_ptr.vmem [resolvable:$true] %s340_s20 }
  0x68   : > { %s1756_s24 = scalar_lea.hbm %s2399_s7, 4096  ;;  %p1757_p7 = scmp.lt.u32.totalorder %s2089_s30, %s2399_s7 }
  0x69   : > { %p1754_p12 = pnand %p1752_p4, %p2041_p6  ;;  %p1758_p9 = scmp.lt.u32.totalorder %s1756_s24, %s1751_s12 }
  0x6a   : > { %p1760_p1 = scmp.lt.u32.totalorder %s1751_s12, %s2089_s30 }
  0x6b   : > { %p1755_p5 = pneg %p1754_p12  ;;  %p1759_p10 = por %p1758_p9, %p1757_p7 }
  0x6d   : > { %p1761_p3 = por %p1760_p1, %p1759_p10 }
  0x6f   : > { %p1762_p8 = pnand %p1761_p3, %p1755_p5 }
  0x71   : > { %1765 = shalt.err (!%p1762_p8)
}
  0x72   : > { %s1766_s6 = scalar_lea.vmem %s2119_s20, 2048  ;;  %s1893_s26 = smov [#allocation13]  }
  0x73   : > { %p1767_p11 = scmp.ne.s32.totalorder %s2119_s20, %s1766_s6  ;;  %s1771_s13 = sshll.u32 %s1893_s26, 4  ;;  %s1772_s13 = int_to_ptr.vmem [resolvable:$false] %s1771_s13 }
  0x74   : > { %s1773_s5 = scalar_lea.vmem %s1772_s13, 4096  ;;  %p1774_p4 = scmp.lt.s32.totalorder %s2119_s20, %s1772_s13 }
  0x75   : > { %p1769_p13 = pnand %p1767_p11, %p2041_p6  ;;  %p1775_p12 = scmp.lt.s32.totalorder %s1773_s5, %s1766_s6 }
  0x77   : > { %p1770_p0 = pneg %p1769_p13  ;;  %p1776_p7 = por %p1775_p12, %p1774_p4 }
  0x79   : > { %p1777_p9 = pnand %p1776_p7, %p1770_p0 }
  0x7b   : > { %1780 = shalt.err (!%p1777_p9)
}
  0x7c   : > { %1620 = dma.hbm_to_vmem [thread:$0]  (!%p2019_p2), %s2089_s30, 2048, %s2119_s20, %s2035_s25, %s2426_s14, %s2426_s14, %s2425_s11  }
  0x7d   : > { %s2150_s22 = scalar_lea.hbm %s2400_s8, %s2017_s18  ;;  %s354_s23 = scalar_lea.vmem [#allocation14], %s2014_s17 }
  0x7e   : > { %s361_s24 = sshll.u32 %s354_s23, 4  ;;  %s351_s29 = scalar_lea.sflag [#allocation15], %s2011_s16  ;;  %s2153_s24 = int_to_ptr.vmem [resolvable:$true] %s361_s24 }
  0x7f   : > { %s1781_s6 = scalar_lea.hbm %s2150_s22, 2048  ;;  %s1786_s20 = scalar_lea.hbm %s2400_s8, 4096 }
  0x80   : > { %p1782_p5 = scmp.ne.s32.totalorder %s2150_s22, %s1781_s6  ;;  %p1787_p3 = scmp.lt.u32.totalorder %s2150_s22, %s2400_s8 }
  0x81   : > { %p1788_p8 = scmp.lt.u32.totalorder %s1786_s20, %s1781_s6  ;;  %p1790_p13 = scmp.lt.u32.totalorder %s1781_s6, %s2150_s22 }
  0x82   : > { %p1784_p10 = pnand %p1782_p5, %p2041_p6 }
  0x83   : > { %p1789_p11 = por %p1788_p8, %p1787_p3 }
  0x84   : > { %p1785_p1 = pneg %p1784_p10 }
  0x85   : > { %p1791_p0 = por %p1790_p13, %p1789_p11 }
  0x87   : > { %p1792_p4 = pnand %p1791_p0, %p1785_p1 }
  0x89   : > { %1795 = shalt.err (!%p1792_p4)
}
  0x8a   : > { %s1796_s17 = scalar_lea.vmem %s2153_s24, 2048  ;;  %s1894_s13 = smov [#allocation14]  }
  0x8b   : > { %p1797_p12 = scmp.ne.s32.totalorder %s2153_s24, %s1796_s17  ;;  %s1801_s5 = sshll.u32 %s1894_s13, 4  ;;  %s1802_s5 = int_to_ptr.vmem [resolvable:$false] %s1801_s5 }
  0x8c   : > { %s1803_s21 = scalar_lea.vmem %s1802_s5, 4096  ;;  %p1804_p5 = scmp.lt.s32.totalorder %s2153_s24, %s1802_s5 }
  0x8d   : > { %p1799_p7 = pnand %p1797_p12, %p2041_p6  ;;  %p1805_p10 = scmp.lt.s32.totalorder %s1803_s21, %s1796_s17 }
  0x8f   : > { %p1800_p9 = pneg %p1799_p7  ;;  %p1806_p3 = por %p1805_p10, %p1804_p5 }
  0x91   : > { %p1807_p8 = pnand %p1806_p3, %p1800_p9 }
  0x93   : > { %1810 = shalt.err (!%p1807_p8)
}
  0x94   : > { %1623 = dma.hbm_to_vmem [thread:$0]  (!%p2019_p2), %s2150_s22, 2048, %s2153_s24, %s351_s29, %s2426_s14, %s2426_s14, %s2425_s11  }
  0x95   : > { %p2427_p6 = scmp.ne.s32.totalorder %s2423_s0, 0 }
  0x96   : > { %s382_s27 = sand.u32 (!%p2427_p6), 1, %s1877_s28   ;;  %p2428_p1 = scmp.ne.s32.totalorder (!%p2427_p6), %s2417_s15, 0 }
  0x97   : > { %380 = sbr.rel (%p2427_p6) target bundleno = 1160 (0x488), region = 52  ;;  %s1236_s12 = sshll.u32 (!%p2427_p6), %s382_s27, 7 }
  0x98   : > { %s383_s23 = scalar_lea.sflag (!%p2427_p6), [#allocation9], %s382_s27  ;;  %s2185_s6 = scalar_lea.vmem (!%p2427_p6), [#allocation8], %s1236_s12 }
  0x9e   : > { %1856 = dma.done.wait (%p2428_p1), %s383_s23, 2048  }
  0x9f   : > { %1858 = vsyncadd (%p2428_p1), %s383_s23, 4294965248  ;;  %s391_s16 = sand.u32 1, %s1989_s1   ;;  %s2192_s11 = scalar_lea.vmem [#allocation11], %s1236_s12 }
  0xa0   : > { %s392_s19 = scalar_lea.sflag [#allocation12], %s391_s16 }
  0xa1   : > { %1860 = dma.done.wait (%p2428_p1), %s392_s19, 4096  }
  0xa2   : > { %1862 = vsyncadd (%p2428_p1), %s392_s19, 4294963200  ;;  %s2198_s0 = scalar_lea.vmem [#allocation13], %s1236_s12  ;;  %s410_s14 = scalar_lea.sflag [#allocation15], %s382_s27 }
  0xa3   : > { %s2200_s22 = scalar_lea.vmem [#allocation14], %s1236_s12 }
  0xa4   : > { %1864 = dma.done.wait (%p2428_p1), %s410_s14, 2048  }
  0xa5   : > { %1866 = vsyncadd (%p2428_p1), %s410_s14, 4294965248  ;;  %p463_p2 = scmp.lt.s32.totalorder %s1989_s1, 1  ;;  %p1241_p11 = scmp.ne.s32.totalorder %s1989_s1, 0 }
  0xa6   : > { %v474_v0 = vld [vmem:[%s2394_s2] sm:$0xff] (!%p1241_p11) }
  0xa7   : > { %s2208_s24 = scalar_select %p463_p2, %s1989_s1, 1 }
  0xa8   : > { %473 = sbr.rel (%p1241_p11) target bundleno = 175 (0xaf), region = 72  ;;  %475 = vst [vmem:[#allocation2] sm:$0xff] (!%p1241_p11), %v474_v0 }
  0xa9   : > { %s465_s30 = scalar_lea.vmem %s2396_s4, %s2208_s24  ;;  %s1240_s20 = sshll.u32 %s2208_s24, 2 }
  0xaa   : > { %s2218_s17 = scalar_lea.vmem %s2401_s9, %s1240_s20 }
  0xaf PF: > { %v480_v1 = vld [vmem:[%s2395_s3] sm:$0xff]  ;;  %v1895_v3 = vmov 0   ;;  %v510_v4 = vld [vmem:[%s2185_s6 + $0x8] sm:$0xff]  ;;  %v511_v5 = vld [vmem:[%s2185_s6 + $0x10] sm:$0xff]  ;;  %v1896_v38 = vmov 0.0   ;;  %s607_s19 = sld [smem:[#allocation6]] }
  0xb0   : > { %v509_v2 = vld [vmem:[%s2185_s6] sm:$0xff]  ;;  %1668 = vset.pattern.permute.xlu0 %v1895_v3  ;;  %v512_v6 = vld [vmem:[%s2185_s6 + $0x18] sm:$0xff]  ;;  %v481_v9 = vld [vmem:[%s2395_s3 + $0x8] sm:$0xff]  ;;  %606 = vst [vmem:[#allocation4] sm:$0xff] %v1896_v38  ;;  %s1246_s14 = sld [smem:[#allocation7 + $0x1]]  ;;  %v1897_v54 = vmov 0.0|0.0  }
  0xb1   : > { %485 = vperm.xlu0 %1668, %v480_v1   ;;  %v1495_v7 = vpack.c.bf16 %v510_v4, %v509_v2  ;;  %v1499_v8 = vpack.c.bf16 %v512_v6, %v511_v5  ;;  %v513_v10 = vld [vmem:[%s2185_s6 + $0x20] sm:$0xff]  ;;  %v514_v11 = vld [vmem:[%s2185_s6 + $0x28] sm:$0xff]  ;;  %v515_v13 = vld [vmem:[%s2185_s6 + $0x30] sm:$0xff]  ;;  %s2254_s25 = sld [smem:[#allocation6 + $0x1]]  ;;  %1527 = vmatprep.subr.bf16.mxu1 %v1897_v54  ;;  %s2262_s20 = sld [smem:[#allocation7 + $0x2]]  ;;  %vm1898_vm0 = vmmov 0  }
  0xb2   : > { %v1503_v12 = vpack.c.bf16 %v514_v11, %v513_v10  ;;  %v516_v14 = vld [vmem:[%s2185_s6 + $0x38] sm:$0xff]  ;;  %v517_v16 = vld [vmem:[%s2185_s6 + $0x40] sm:$0xff]  ;;  %v518_v17 = vld [vmem:[%s2185_s6 + $0x48] sm:$0xff]  ;;  %s2270_s18 = sld [smem:[#allocation6 + $0x2]]  ;;  %s2279_s15 = sld [smem:[#allocation7 + $0x3]]  ;;  %1422 = vmatprep.mubr.msk.f32.mxu1 %vm1898_vm0, %v1896_v38 }
  0xb3   : > { %1496 = vmatprep.subr.bf16.mxu0 %v1495_v7  ;;  %v1507_v15 = vpack.c.bf16 %v516_v14, %v515_v13  ;;  %v1511_v18 = vpack.c.bf16 %v518_v17, %v517_v16  ;;  %v519_v19 = vld [vmem:[%s2185_s6 + $0x50] sm:$0xff]  ;;  %v520_v20 = vld [vmem:[%s2185_s6 + $0x58] sm:$0xff]  ;;  %v521_v22 = vld [vmem:[%s2185_s6 + $0x60] sm:$0xff]  ;;  %s2294_s5 = sld [smem:[#allocation6 + $0x3]]  ;;  %s2304_s12 = sld [smem:[#allocation7 + $0x4]] }
  0xb4   : > { %1498 = vmatpush3.bf16.msra.mxu0 %v1495_v7  ;;  %v1515_v21 = vpack.c.bf16 %v520_v20, %v519_v19  ;;  %v522_v23 = vld [vmem:[%s2185_s6 + $0x68] sm:$0xff]  ;;  %v523_v25 = vld [vmem:[%s2185_s6 + $0x70] sm:$0xff]  ;;  %v524_v26 = vld [vmem:[%s2185_s6 + $0x78] sm:$0xff]  ;;  %s608_s6 = sld [smem:[#allocation7]]  ;;  %s1251_s23 = sld [smem:[#allocation6 + $0x4]] }
  0xb5   : > { %490 = vperm.xlu0 %1668, %v481_v9   ;;  %1500 = vmatprep.subr.bf16.mxu0 %v1499_v8  ;;  %v1519_v24 = vpack.c.bf16 %v522_v23, %v521_v22  ;;  %v1523_v27 = vpack.c.bf16 %v524_v26, %v523_v25  ;;  %v1242_v28 = vld [vmem:[%s465_s30] ss:$0 sm:$0xff]  ;;  %v1244_v39 = vld [vmem:[%s2218_s17 + $0x1] ss:$0 sm:$0xff]  ;;  %s613_s29 = scalar_lea.vmem [#allocation4], %s607_s19  ;;  %v770_v50 = vld [vmem:[%s2192_s11 + $0x8] sm:$0xff] }
  0xb6   : > { %v1243_v30 = vld [vmem:[%s2218_s17] ss:$0 sm:$0xff]  ;;  %v786_v53 = vld [vmem:[%s2198_s0 + $0x8] sm:$0xff]  ;;  %s620_s30 = scalar_lea.vmem [#allocation2], %s1246_s14  ;;  %v771_v57 = vld [vmem:[%s2192_s11 + $0x10] sm:$0xff]  ;;  %s1256_s14 = sld [smem:[#allocation7 + $0x6]] }
  0xb7   : > { %v614_v46 = vld [vmem:[%s613_s29] sm:$0x1]  ;;  %v772_v58 = vld [vmem:[%s2192_s11 + $0x18] sm:$0xff]  ;;  %v787_v61 = vld [vmem:[%s2198_s0 + $0x10] sm:$0xff]  ;;  %s623_s26 = scalar_lea.vmem [#allocation4], %s2254_s25  ;;  %s630_s13 = scalar_lea.vmem [#allocation2], %s2262_s20 }
  0xb8   : > { %1502 = vmatpush3.bf16.msra.mxu0 %v1499_v8  ;;  %v769_v49 = vld [vmem:[%s2192_s11] sm:$0xff]  ;;  %v1555_v60 = vpack.c.bf16 %v772_v58, %v771_v57  ;;  %v788_v62 = vld [vmem:[%s2198_s0 + $0x18] sm:$0xff]  ;;  %v774_v2 = vld [vmem:[%s2192_s11 + $0x28] sm:$0xff]  ;;  %s633_s21 = scalar_lea.vmem [#allocation4], %s2270_s18  ;;  %s640_s27 = scalar_lea.vmem [#allocation2], %s2279_s15 }
  0xb9   : > { %1504 = vmatprep.subr.bf16.mxu0 %v1503_v12  ;;  %v1552_v51 = vpack.c.bf16 %v770_v50, %v769_v49  ;;  %v785_v52 = vld [vmem:[%s2198_s0] sm:$0xff]  ;;  %v1531_v63 = vpack.c.bf16 %v788_v62, %v787_v61  ;;  %v790_v6 = vld [vmem:[%s2198_s0 + $0x28] sm:$0xff]  ;;  %v775_v9 = vld [vmem:[%s2192_s11 + $0x30] sm:$0xff]  ;;  %s650_s16 = scalar_lea.vmem [#allocation2], %s2304_s12  ;;  %s1257_s18 = sld [smem:[#allocation6 + $0x7]] }
  0xba   : > { %s610_s24 = scalar_lea.vmem [#allocation2], %s608_s6  ;;  %v1528_v55 = vpack.c.bf16 %v786_v53, %v785_v52  ;;  %v621_v56 = vld [vmem:[%s620_s30] sm:$0x1]  ;;  %v776_v10 = vld [vmem:[%s2192_s11 + $0x38] sm:$0xff]  ;;  %v779_v26 = vld [vmem:[%s2192_s11 + $0x50] sm:$0xff]  ;;  %s1253_s6 = sld [smem:[#allocation6 + $0x5]] }
  0xbb   : > { %v611_v44 = vld [vmem:[%s610_s24] sm:$0x1]  ;;  %v1561_v11 = vpack.c.bf16 %v776_v10, %v775_v9  ;;  %v792_v13 = vld [vmem:[%s2198_s0 + $0x38] sm:$0xff]  ;;  %s653_s19 = scalar_lea.vmem [#allocation4], %s1251_s23  ;;  %s1258_s30 = sld [smem:[#allocation7 + $0x7]] }
  0xbc   : > { %1506 = vmatpush3.bf16.msra.mxu0 %v1503_v12  ;;  %1529 = vmatpush3.bf16.msra.mxu1 %v1528_v55  ;;  %v773_v1 = vld [vmem:[%s2192_s11 + $0x20] sm:$0xff]  ;;  %v791_v12 = vld [vmem:[%s2198_s0 + $0x30] sm:$0xff]  ;;  %s670_s20 = scalar_lea.vmem [#allocation2], %s1256_s14  ;;  %s1260_s15 = sld [smem:[#allocation7 + $0x8]] }
  0xbd   : > { %1508 = vmatprep.subr.bf16.mxu0 %v1507_v15  ;;  %1530 = vmatprep.subr.bf16.mxu1 %v1897_v54  ;;  %v1558_v4 = vpack.c.bf16 %v774_v2, %v773_v1  ;;  %v789_v5 = vld [vmem:[%s2198_s0 + $0x20] sm:$0xff]  ;;  %v1537_v14 = vpack.c.bf16 %v792_v13, %v791_v12  ;;  %s1261_s23 = sld [smem:[#allocation6 + $0x9]]  ;;  %s1266_s14 = sld [smem:[#allocation7 + $0xb]] }
  0xbe   : > { %v1534_v8 = vpack.c.bf16 %v790_v6, %v789_v5  ;;  %v631_v16 = vld [vmem:[%s630_s13] sm:$0x1]  ;;  %p1277_p13 = scmp.ne.s32.totalorder %s1989_s1, 1 }
  0xbf   : > { %v777_v17 = vld [vmem:[%s2192_s11 + $0x40] sm:$0xff] }
  0xc0   : > { %1510 = vmatpush3.bf16.msra.mxu0 %v1507_v15  ;;  %1532 = vmatpush3.bf16.msra.mxu1 %v1531_v63  ;;  %v793_v20 = vld [vmem:[%s2198_s0 + $0x40] sm:$0xff]  ;;  %s663_s25 = scalar_lea.vmem [#allocation4], %s1253_s6  ;;  %s1263_s6 = sld [smem:[#allocation6 + $0xa]] }
  0xc1   : > { %1512 = vmatprep.subr.bf16.mxu0 %v1511_v18  ;;  %1533 = vmatprep.subr.bf16.mxu1 %v1897_v54  ;;  %v2323_v50 = vld [vmem:[#allocation2] sm:$0xff]  ;;  %s680_s13 = scalar_lea.vmem [#allocation2], %s1258_s30  ;;  %s1268_s30 = sld [smem:[#allocation7 + $0xc]] }
  0xc2   : > { %v651_v52 = vld [vmem:[%s650_s16] sm:$0x1]  ;;  %s690_s12 = scalar_lea.vmem [#allocation2], %s1260_s15  ;;  %s1270_s15 = sld [smem:[#allocation7 + $0xd]] }
  0xc3   : > { %v671_v63 = vld [vmem:[%s670_s20] sm:$0x1]  ;;  %s720_s20 = scalar_lea.vmem [#allocation2], %s1266_s14 }
  0xc4   : > { %1514 = vmatpush3.bf16.msra.mxu0 %v1511_v18  ;;  %1535 = vmatpush3.bf16.msra.mxu1 %v1534_v8  ;;  %v778_v18 = vld [vmem:[%s2192_s11 + $0x48] sm:$0xff]  ;;  %v691_v9 = vld [vmem:[%s690_s12] sm:$0x1] }
  0xc5   : > { %1516 = vmatprep.subr.bf16.mxu0 %v1515_v21  ;;  %1536 = vmatprep.subr.bf16.mxu1 %v1897_v54  ;;  %v1564_v19 = vpack.c.bf16 %v778_v18, %v777_v17 }
  0xc8   : > { %1518 = vmatpush3.bf16.msra.mxu0 %v1515_v21  ;;  %1538 = vmatpush3.bf16.msra.mxu1 %v1537_v14  ;;  %v794_v21 = vld [vmem:[%s2198_s0 + $0x48] sm:$0xff]  ;;  %s740_s12 = scalar_lea.vmem [#allocation2], %s1270_s15 }
  0xc9   : > { %1520 = vmatprep.subr.bf16.mxu0 %v1519_v24  ;;  %1539 = vmatprep.subr.bf16.mxu1 %v1897_v54  ;;  %v1540_v23 = vpack.c.bf16 %v794_v21, %v793_v20 }
  0xcc   : > { %1522 = vmatpush3.bf16.msra.mxu0 %v1519_v24  ;;  %1541 = vmatpush3.bf16.msra.mxu1 %v1540_v23 }
  0xcd   : > { %1524 = vmatprep.subr.bf16.mxu0 %v1523_v27  ;;  %1542 = vmatprep.subr.bf16.mxu1 %v1897_v54 }
  0xd0   : > { %1526 = vmatpush3.bf16.msra.mxu0 %v1523_v27  ;;  %v780_v27 = vld [vmem:[%s2192_s11 + $0x58] sm:$0xff] }
  0xd1   : > { %1551 = vmatprep.subr.bf16.mxu0 %v1897_v54 }
 0x130   : > { %v486_v29 = vpop.permute.xlu0 %485 }
 0x131   : > { %v499_v31 = vmul.f32 %v1242_v28, %v486_v29  ;;  %v795_v29 = vld [vmem:[%s2198_s0 + $0x50] sm:$0xff] }
 0x133   : > { %v505_v32 = vadd.f32 %v1243_v30, %v499_v31 }
 0x134   : > { %v491_v33 = vpop.permute.xlu0 %490 }
 0x135   : > { %v500_v34 = vmul.f32 %v1242_v28, %v491_v33  ;;  %v507_v35 = vmax.f32 %v505_v32, 0.0  ;;  %v1567_v28 = vpack.c.bf16 %v780_v27, %v779_v26  ;;  %v641_v33 = vld [vmem:[%s640_s27] sm:$0x1]  ;;  %s1262_s27 = sld [smem:[#allocation7 + $0x9]] }
 0x137   : > { %v506_v36 = vadd.f32 %v1243_v30, %v500_v34  ;;  %1387 = vmatprep.mubr.f32.mxu0 %v507_v35  ;;  %v796_v30 = vld [vmem:[%s2198_s0 + $0x58] sm:$0xff]  ;;  %v781_v34 = vld [vmem:[%s2192_s11 + $0x60] sm:$0xff]  ;;  %v782_v35 = vld [vmem:[%s2192_s11 + $0x68] sm:$0xff] }
 0x138   : > { %v1543_v31 = vpack.c.bf16 %v796_v30, %v795_v29 }
 0x139   : > { %v508_v37 = vmax.f32 %v506_v36, 0.0  ;;  %v797_v36 = vld [vmem:[%s2198_s0 + $0x60] sm:$0xff] }
 0x13a   : > { %1544 = vmatpush3.bf16.msra.mxu1 %v1543_v31 }
 0x13b   : > { %1388 = vmatmul.mubr.f32.vlgmr.msra.gmra.mrb[0].mxu0 %v508_v37  ;;  %1545 = vmatprep.subr.bf16.mxu1 %v1897_v54  ;;  %v1570_v37 = vpack.c.bf16 %v782_v35, %v781_v34  ;;  %s700_s16 = scalar_lea.vmem [#allocation2], %s1262_s27  ;;  %s1272_s27 = sld [smem:[#allocation7 + $0xe]]  ;;  %v741_v34 = vld [vmem:[%s740_s12] sm:$0x1] }
 0x13c   : > { %1553 = vmatpush3.bf16.msra.mxu0 %v1552_v51  ;;  %1457 = vmatprep.mubr.msk.f32.mxu0 %vm1898_vm0, %v1896_v38  ;;  %v701_v14 = vld [vmem:[%s700_s16] sm:$0x1] }
 0x13d   : > { %1554 = vmatprep.subr.bf16.mxu0 %v1897_v54 }
 0x140   : > { %1556 = vmatpush3.bf16.msra.mxu0 %v1555_v60 }
 0x141   : > { %1557 = vmatprep.subr.bf16.mxu0 %v1897_v54  ;;  %s750_s16 = scalar_lea.vmem [#allocation2], %s1272_s27 }
 0x144   : > { %1559 = vmatpush3.bf16.msra.mxu0 %v1558_v4  ;;  %v681_v4 = vld [vmem:[%s680_s13] sm:$0x1]  ;;  %s730_s13 = scalar_lea.vmem [#allocation2], %s1268_s30 }
 0x145   : > { %1560 = vmatprep.subr.bf16.mxu0 %v1897_v54  ;;  %v731_v29 = vld [vmem:[%s730_s13] sm:$0x1] }
 0x148   : > { %1562 = vmatpush3.bf16.msra.mxu0 %v1561_v11 }
 0x149   : > { %1563 = vmatprep.subr.bf16.mxu0 %v1897_v54 }
 0x14c   : > { %1565 = vmatpush3.bf16.msra.mxu0 %v1564_v19 }
 0x14d   : > { %1566 = vmatprep.subr.bf16.mxu0 %v1897_v54 }
 0x150   : > { %1568 = vmatpush3.bf16.msra.mxu0 %v1567_v28 }
 0x151   : > { %1569 = vmatprep.subr.bf16.mxu0 %v1897_v54 }
 0x154   : > { %1571 = vmatpush3.bf16.msra.mxu0 %v1570_v37 }
 0x155   : > { %1572 = vmatprep.subr.bf16.mxu0 %v1897_v54 }
 0x20e   : > { %v1389_v40 = vpop.f32.mrb[0].mxu0 }
 0x20f   : > { %v601_v41 = vadd.f32 %v1389_v40, %v1244_v39  ;;  %v595_v42 = vpop.f32.mrb[1].mxu0  ;;  %v783_v40 = vld [vmem:[%s2192_s11 + $0x70] sm:$0xff] }
 0x210   : > { %v596_v43 = vadd.f32 %v1244_v39, %v595_v42  ;;  %v798_v39 = vld [vmem:[%s2198_s0 + $0x68] sm:$0xff] }
 0x211   : > { %605 = vst [vmem:[#allocation3 + $0x8] sm:$0xff] %v601_v41  ;;  %v784_v41 = vld [vmem:[%s2192_s11 + $0x78] sm:$0xff]  ;;  %v1546_v42 = vpack.c.bf16 %v798_v39, %v797_v36  ;;  %s643_s11 = scalar_lea.vmem [#allocation4], %s2294_s5  ;;  %s1259_s5 = sld [smem:[#allocation6 + $0x8]] }
 0x212   : > { %604 = vst [vmem:[#allocation3] sm:$0xff] %v596_v43  ;;  %v799_v43 = vld [vmem:[%s2198_s0 + $0x70] sm:$0xff] }
 0x213   : > { %1547 = vmatpush3.bf16.msra.mxu1 %v1546_v42 }
 0x214   : > { %1548 = vmatprep.subr.bf16.mxu1 %v1897_v54 }
 0x218   : > { %v689_v8 = vld [vmem:[#allocation3 + $0x8] sm:$0x1]  ;;  %v699_v13 = vld [vmem:[#allocation3 + $0x9] sm:$0x1]  ;;  %v709_v18 = vld [vmem:[#allocation3 + $0xa] sm:$0x1] }
 0x219   : > { %v609_v45 = vld [vmem:[#allocation3] sm:$0x1]  ;;  %v619_v59 = vld [vmem:[#allocation3 + $0x1] sm:$0x1]  ;;  %v629_v15 = vld [vmem:[#allocation3 + $0x2] sm:$0x1]  ;;  %v692_v10 = vadd.f32 %v691_v9, %v689_v8 }
 0x21a   : > { %v612_v47 = vadd.f32 %v611_v44, %v609_v45  ;;  %v622_v0 = vadd.f32 %v621_v56, %v619_v59  ;;  %v632_v22 = vadd.f32 %v631_v16, %v629_v15  ;;  %v639_v32 = vld [vmem:[#allocation3 + $0x3] sm:$0x1]  ;;  %v800_v44 = vld [vmem:[%s2198_s0 + $0x78] sm:$0xff]  ;;  %v1573_v45 = vpack.c.bf16 %v784_v41, %v783_v40  ;;  %s1254_s0 = sld [smem:[#allocation7 + $0x5]]  ;;  %v649_v51 = vld [vmem:[#allocation3 + $0x4] sm:$0x1] }
 0x21b   : > { %v652_v53 = vadd.f32 %v651_v52, %v649_v51  ;;  %v659_v57 = vld [vmem:[#allocation3 + $0x5] sm:$0x1]  ;;  %v669_v62 = vld [vmem:[#allocation3 + $0x6] sm:$0x1]  ;;  %v702_v15 = vadd.f32 %v701_v14, %v699_v13  ;;  %v719_v23 = vld [vmem:[#allocation3 + $0xb] sm:$0x1] }
 0x21c   : > { %v615_v48 = vadd.f32 %v614_v46, %v612_v47  ;;  %v642_v46 = vadd.f32 %v641_v33, %v639_v32  ;;  %v1549_v47 = vpack.c.bf16 %v800_v44, %v799_v43  ;;  %1574 = vmatpush3.bf16.msra.mxu0 %v1573_v45  ;;  %v729_v28 = vld [vmem:[#allocation3 + $0xc] sm:$0x1]  ;;  %v739_v33 = vld [vmem:[#allocation3 + $0xd] sm:$0x1]  ;;  %v749_v39 = vld [vmem:[#allocation3 + $0xe] sm:$0x1] }
 0x21d   : > { %v732_v30 = vadd.f32 %v731_v29, %v729_v28  ;;  %v742_v35 = vadd.f32 %v741_v34, %v739_v33  ;;  %v751_v40 = vld [vmem:[%s750_s16] sm:$0x1]  ;;  %v759_v44 = vld [vmem:[#allocation3 + $0xf] sm:$0x1]  ;;  %v948_v51 = vld [vmem:[%s2200_s22 + $0x8] sm:$0xff] }
 0x21e   : > { %616 = vst [vmem:[%s613_s29] sm:$0x1] %v615_v48  ;;  %1550 = vmatpush3.bf16.msra.mxu1 %v1549_v47  ;;  %s1255_s29 = sld [smem:[#allocation6 + $0x6]]  ;;  %v752_v41 = vadd.f32 %v751_v40, %v749_v39  ;;  %v1275_v13 = vld [vmem:[%s2218_s17 + $0x2] ss:$0 sm:$0xff] }
 0x21f   : > { %1575 = vmatprep.subr.bf16.mxu1 %v1897_v54  ;;  %1458 = vmatmul.mubr.f32.vlgmr.msra.gmra.mrb[2].mxu0 %v2323_v50 }
 0x220   : > { %s660_s24 = scalar_lea.vmem [#allocation2], %s1254_s0  ;;  %s1264_s0 = sld [smem:[#allocation7 + $0xa]] }
 0x221   : > { %v661_v58 = vld [vmem:[%s660_s24] sm:$0x1] }
 0x222   : > { %v662_v59 = vadd.f32 %v661_v58, %v659_v57  ;;  %v951_v58 = vld [vmem:[%s2200_s22 + $0x20] sm:$0xff] }
 0x225   : > { %v624_v3 = vld [vmem:[%s623_s26] sm:$0x1] }
 0x226   : > { %v625_v7 = vadd.f32 %v624_v3, %v622_v0  ;;  %v672_v0 = vadd.f32 %v671_v63, %v669_v62  ;;  %v679_v3 = vld [vmem:[#allocation3 + $0x7] sm:$0x1]  ;;  %s710_s24 = scalar_lea.vmem [#allocation2], %s1264_s0  ;;  %s1274_s0 = sld [smem:[#allocation7 + $0xf]]  ;;  %v954_v62 = vld [vmem:[%s2200_s22 + $0x38] sm:$0xff] }
 0x227   : > { %v682_v5 = vadd.f32 %v681_v4, %v679_v3  ;;  %v711_v19 = vld [vmem:[%s710_s24] sm:$0x1]  ;;  %v958_v3 = vld [vmem:[%s2200_s22 + $0x58] sm:$0xff] }
 0x228   : > { %626 = vst [vmem:[%s623_s26] sm:$0x1] %v625_v7  ;;  %s673_s26 = scalar_lea.vmem [#allocation4], %s1255_s29  ;;  %v712_v20 = vadd.f32 %v711_v19, %v709_v18  ;;  %s1265_s29 = sld [smem:[#allocation6 + $0xb]]  ;;  %v1276_v19 = vld [vmem:[%s2218_s17 + $0x3] ss:$0 sm:$0xff] }
 0x22c   : > { %s760_s14 = scalar_lea.vmem [#allocation2], %s1274_s0 }
 0x22d   : > { %v761_v45 = vld [vmem:[%s760_s14] sm:$0x1] }
 0x22f   : > { %v634_v24 = vld [vmem:[%s633_s21] sm:$0x1] }
 0x230   : > { %v635_v25 = vadd.f32 %v634_v24, %v632_v22  ;;  %v721_v24 = vld [vmem:[%s720_s20] sm:$0x1] }
 0x232   : > { %636 = vst [vmem:[%s633_s21] sm:$0x1] %v635_v25  ;;  %s683_s21 = scalar_lea.vmem [#allocation4], %s1257_s18  ;;  %v722_v25 = vadd.f32 %v721_v24, %v719_v23  ;;  %s1267_s18 = sld [smem:[#allocation6 + $0xc]] }
 0x239   : > { %v644_v48 = vld [vmem:[%s643_s11] sm:$0x1] }
 0x23a   : > { %v645_v49 = vadd.f32 %v644_v48, %v642_v46  ;;  %v762_v46 = vadd.f32 %v761_v45, %v759_v44 }
 0x23c   : > { %646 = vst [vmem:[%s643_s11] sm:$0x1] %v645_v49  ;;  %s693_s11 = scalar_lea.vmem [#allocation4], %s1259_s5  ;;  %s1269_s5 = sld [smem:[#allocation6 + $0xd]]  ;;  %v947_v49 = vld [vmem:[%s2200_s22] sm:$0xff] }
 0x23d   : > { %v1576_v52 = vpack.c.bf16 %v948_v51, %v947_v49 }
 0x243   : > { %v654_v55 = vld [vmem:[%s653_s19] sm:$0x1] }
 0x244   : > { %v655_v56 = vadd.f32 %v654_v55, %v652_v53  ;;  %v949_v53 = vld [vmem:[%s2200_s22 + $0x10] sm:$0xff]  ;;  %v950_v55 = vld [vmem:[%s2200_s22 + $0x18] sm:$0xff] }
 0x245   : > { %v1579_v57 = vpack.c.bf16 %v950_v55, %v949_v53 }
 0x246   : > { %656 = vst [vmem:[%s653_s19] sm:$0x1] %v655_v56  ;;  %s703_s19 = scalar_lea.vmem [#allocation4], %s1261_s23  ;;  %s1271_s23 = sld [smem:[#allocation6 + $0xe]] }
 0x24d   : > { %v664_v60 = vld [vmem:[%s663_s25] sm:$0x1] }
 0x24e   : > { %v665_v61 = vadd.f32 %v664_v60, %v662_v59  ;;  %v952_v59 = vld [vmem:[%s2200_s22 + $0x28] sm:$0xff] }
 0x24f   : > { %v1582_v60 = vpack.c.bf16 %v952_v59, %v951_v58 }
 0x250   : > { %666 = vst [vmem:[%s663_s25] sm:$0x1] %v665_v61  ;;  %s713_s25 = scalar_lea.vmem [#allocation4], %s1263_s6  ;;  %s1273_s6 = sld [smem:[#allocation6 + $0xf]]  ;;  %v953_v61 = vld [vmem:[%s2200_s22 + $0x30] sm:$0xff] }
 0x251   : > { %v1585_v63 = vpack.c.bf16 %v954_v62, %v953_v61 }
 0x256   : > { %s763_s24 = scalar_lea.vmem [#allocation4], %s1273_s6 }
 0x257   : > { %v674_v1 = vld [vmem:[%s673_s26] sm:$0x1] }
 0x258   : > { %v675_v2 = vadd.f32 %v674_v1, %v672_v0  ;;  %v955_v0 = vld [vmem:[%s2200_s22 + $0x40] sm:$0xff] }
 0x25a   : > { %676 = vst [vmem:[%s673_s26] sm:$0x1] %v675_v2  ;;  %s723_s26 = scalar_lea.vmem [#allocation4], %s1265_s29  ;;  %v957_v2 = vld [vmem:[%s2200_s22 + $0x50] sm:$0xff] }
 0x25b   : > { %v1591_v4 = vpack.c.bf16 %v958_v3, %v957_v2 }
 0x261   : > { %v684_v6 = vld [vmem:[%s683_s21] sm:$0x1] }
 0x262   : > { %v685_v7 = vadd.f32 %v684_v6, %v682_v5  ;;  %v959_v5 = vld [vmem:[%s2200_s22 + $0x60] sm:$0xff]  ;;  %v960_v6 = vld [vmem:[%s2200_s22 + $0x68] sm:$0xff] }
 0x264   : > { %686 = vst [vmem:[%s683_s21] sm:$0x1] %v685_v7  ;;  %s733_s21 = scalar_lea.vmem [#allocation4], %s1267_s18  ;;  %v1594_v7 = vpack.c.bf16 %v960_v6, %v959_v5 }
 0x26b   : > { %v694_v11 = vld [vmem:[%s693_s11] sm:$0x1] }
 0x26c   : > { %v695_v12 = vadd.f32 %v694_v11, %v692_v10  ;;  %v961_v10 = vld [vmem:[%s2200_s22 + $0x70] sm:$0xff]  ;;  %v962_v11 = vld [vmem:[%s2200_s22 + $0x78] sm:$0xff] }
 0x26e   : > { %696 = vst [vmem:[%s693_s11] sm:$0x1] %v695_v12  ;;  %s743_s11 = scalar_lea.vmem [#allocation4], %s1269_s5  ;;  %v1597_v12 = vpack.c.bf16 %v962_v11, %v961_v10 }
 0x275   : > { %v704_v16 = vld [vmem:[%s703_s19] sm:$0x1] }
 0x276   : > { %v705_v17 = vadd.f32 %v704_v16, %v702_v15 }
 0x278   : > { %706 = vst [vmem:[%s703_s19] sm:$0x1] %v705_v17  ;;  %s753_s19 = scalar_lea.vmem [#allocation4], %s1271_s23 }
 0x27f   : > { %v714_v21 = vld [vmem:[%s713_s25] sm:$0x1] }
 0x280   : > { %v715_v22 = vadd.f32 %v714_v21, %v712_v20 }
 0x282   : > { %716 = vst [vmem:[%s713_s25] sm:$0x1] %v715_v22 }
 0x289   : > { %v724_v26 = vld [vmem:[%s723_s26] sm:$0x1] }
 0x28a   : > { %v725_v27 = vadd.f32 %v724_v26, %v722_v25 }
 0x28c   : > { %726 = vst [vmem:[%s723_s26] sm:$0x1] %v725_v27 }
 0x293   : > { %v734_v31 = vld [vmem:[%s733_s21] sm:$0x1] }
 0x294   : > { %v735_v32 = vadd.f32 %v734_v31, %v732_v30 }
 0x296   : > { %736 = vst [vmem:[%s733_s21] sm:$0x1] %v735_v32 }
 0x29d   : > { %v744_v36 = vld [vmem:[%s743_s11] sm:$0x1] }
 0x29e   : > { %v745_v37 = vadd.f32 %v744_v36, %v742_v35 }
 0x2a0   : > { %746 = vst [vmem:[%s743_s11] sm:$0x1] %v745_v37 }
 0x2a7   : > { %v754_v42 = vld [vmem:[%s753_s19] sm:$0x1] }
 0x2a8   : > { %v755_v43 = vadd.f32 %v754_v42, %v752_v41 }
 0x2aa   : > { %756 = vst [vmem:[%s753_s19] sm:$0x1] %v755_v43 }
 0x2b1   : > { %v764_v47 = vld [vmem:[%s763_s24] sm:$0x1] }
 0x2b2   : > { %v765_v48 = vadd.f32 %v764_v47, %v762_v46 }
 0x2b4   : > { %766 = vst [vmem:[%s763_s24] sm:$0x1] %v765_v48 }
 0x2bb   : > { %v768_v56 = vld [vmem:[#allocation4] sm:$0xff] }
 0x2bc   : > { %1423 = vmatmul.mubr.f32.vlgmr.msra.gmra.mrb[0].mxu1 %v768_v56 }
 0x2bd   : > { %1577 = vmatpush3.bf16.msra.mxu1 %v1576_v52  ;;  %1492 = vmatprep.mubr.msk.f32.mxu1 %vm1898_vm0, %v1896_v38  ;;  %v956_v38 = vld [vmem:[%s2200_s22 + $0x48] sm:$0xff] }
 0x2be   : > { %1578 = vmatprep.subr.bf16.mxu1 %v1897_v54  ;;  %v1588_v1 = vpack.c.bf16 %v956_v38, %v955_v0 }
 0x2c1   : > { %1580 = vmatpush3.bf16.msra.mxu1 %v1579_v57 }
 0x2c2   : > { %1581 = vmatprep.subr.bf16.mxu1 %v1897_v54 }
 0x2c5   : > { %1583 = vmatpush3.bf16.msra.mxu1 %v1582_v60 }
 0x2c6   : > { %1584 = vmatprep.subr.bf16.mxu1 %v1897_v54 }
 0x2c9   : > { %1586 = vmatpush3.bf16.msra.mxu1 %v1585_v63 }
 0x2ca   : > { %1587 = vmatprep.subr.bf16.mxu1 %v1897_v54 }
 0x2cd   : > { %1589 = vmatpush3.bf16.msra.mxu1 %v1588_v1 }
 0x2ce   : > { %1590 = vmatprep.subr.bf16.mxu1 %v1897_v54 }
 0x2d1   : > { %1592 = vmatpush3.bf16.msra.mxu1 %v1591_v4 }
 0x2d2   : > { %1593 = vmatprep.subr.bf16.mxu1 %v1897_v54 }
 0x2d5   : > { %1595 = vmatpush3.bf16.msra.mxu1 %v1594_v7 }
 0x2d6   : > { %1596 = vmatprep.subr.bf16.mxu1 %v1897_v54 }
 0x2d9   : > { %1598 = vmatpush3.bf16.msra.mxu1 %v1597_v12 }
 0x2f2   : > { %v937_v8 = vpop.f32.mrb[2].mxu0 }
 0x2f3   : > { %v1459_v9 = vpop.f32.mrb[3].mxu0 }
 0x38f   : > { %v867_v14 = vpop.f32.mrb[0].mxu1 }
 0x390   : > { %v938_v15 = vadd.f32 %v937_v8, %v867_v14  ;;  %v1424_v16 = vpop.f32.mrb[1].mxu1 }
 0x392   : > { %v945_v17 = vadd.f32 %v1275_v13, %v938_v15 }
 0x394   : > { %v946_v18 = vmax.f32 %v945_v17, 0.0 }
 0x396   : > { %1493 = vmatmul.mubr.f32.vlgmr.msra.gmra.mrb[2].mxu1 %v946_v18 }
 0x468   : > { %1042 = sbr.rel (%p1277_p13) target bundleno = 1135 (0x46f), region = 76 }
 0x469   : > { %v1033_v20 = vpop.f32.mrb[2].mxu1 }
 0x46a   : > { %v1034_v21 = vadd.f32 %v1276_v19, %v1033_v20  ;;  %v1494_v22 = vpop.f32.mrb[3].mxu1 }
 0x46c   : > { %v1037_v23 = vadd.f32 %v1034_v21, %v2323_v50 }
 0x46e   : > { %1038 = vst [vmem:[#allocation2] sm:$0xff] %v1037_v23  ;;  %1043 = vst [vmem:[#allocation16] sm:$0xff] (!%p1277_p13), %v1037_v23 }
 0x46f PF: > { %p1625_p0 = scmp.eq.s32.totalorder %s1989_s1, 1  ;;  %s1899_s22 = smov [#allocation16]  }
 0x470   : > { %s1051_s29 = sshll.u32 %s1899_s22, 4  ;;  %s1052_s29 = int_to_ptr.vmem [resolvable:$true] %s1051_s29 }
 0x471   : > { %s1811_s25 = scalar_lea.vmem %s1052_s29, 128  ;;  %p1818_p9 = scmp.lt.s32.totalorder %s1052_s29, %s1052_s29 }
 0x472   : > { %p1812_p4 = scmp.ne.s32.totalorder %s1052_s29, %s1811_s25  ;;  %p1819_p5 = scmp.lt.s32.totalorder %s1811_s25, %s1811_s25 }
 0x474   : > { %p1813_p12 = pnand %p1812_p4, %p1625_p0  ;;  %p1820_p10 = por %p1819_p5, %p1818_p9 }
 0x476   : > { %p1814_p7 = pneg %p1813_p12 }
 0x478   : > { %p1821_p3 = pnand %p1820_p10, %p1814_p7 }
 0x47a   : > { %1824 = shalt.err (!%p1821_p3)
}
 0x47b   : > { %s1825_s20 = scalar_lea.hbm %s2402_s10, 128 }
 0x47c   : > { %p1826_p8 = scmp.ne.s32.totalorder %s2402_s10, %s1825_s20  ;;  %p1831_p2 = scmp.lt.u32.totalorder %s1825_s20, %s2402_s10 }
 0x47e   : > { %p1827_p6 = pnand %p1826_p8, %p1625_p0 }
 0x480   : > { %p1828_p1 = pneg %p1827_p6 }
 0x482   : > { %p1833_p11 = pnand %p1831_p2, %p1828_p1 }
 0x484   : > { %1836 = shalt.err (!%p1833_p11)
}
 0x485   : > { %1608 = dma.vmem_to_hbm [thread:$0]  (%p1625_p0), %s1052_s29, 128, %s2402_s10, [#allocation10]  }
 0x486   : > { %1868 = dma.done.wait (%p1625_p0), [#allocation10], 128  }
 0x487   : > { %1870 = vsyncadd (%p1625_p0), [#allocation10], 4294967168 }
 0x488 PF: > { %s2429_s30 = sld [smem:[#allocation23_spill]]  ;;  %s2430_s12 = sld [smem:[#allocation22_spill]] }
 0x489   : > { %s2431_s29 = sld [smem:[#allocation24_spill]]  ;;  %s2432_s27 = smov %s1877_s28 }
 0x48e   : > { %p35_p13 = scmp.ge.s32.totalorder %s2429_s30, 4   ;;  %s2433_s28 = smov %s2430_s12 }
 0x490   :  { %37 = sbr.rel (!%p35_p13) target bundleno = 31 (0x1f), region = 172 }
 0x497   :  { %1064 = vsyncpa [#allocation9], 1 }
 0x498   :  { %1066 = vsyncpa [#allocation9 + $0x1], 1 }
 0x499   :  { %1067 = vsyncpa [#allocation12], 1 }
 0x49a   :  { %1069 = vsyncpa [#allocation12 + $0x1], 1 }
 0x49b   :  { %1070 = vsyncpa [#allocation15], 1 }
 0x49c   :  { %1072 = vsyncpa [#allocation15 + $0x1], 1 }
 0x49d   :  { %1073 = vsyncpa [#allocation10], 1 }
 0x49e   :  { %1075 = vsyncpa [#allocation10 + $0x1], 1 }

</bundles_post_ra>
